<compile_context>
chip_gen: v5e
topology: v5e:2x2
jax: 0.10.0
libtpu: 0.0.40
codegen_flags: <defaults>
</compile_context>

<pallas_src>
import math
import functools

import jax
import jax.numpy as jnp
import numpy as np
from jax.experimental import pallas as pl
from jax.experimental.pallas import tpu as pltpu


def encoder_layer_kernel(num_heads, eps,
                         xq_ref, xkv_ref, bias_ref,
                         wq_ref, bq_ref, wkv_ref, bkv_ref, wo_ref, bo_ref,
                         g1_ref, beta1_ref,
                         w12_ref, b12_ref, w3_ref, b3_ref,
                         g2_ref, beta2_ref,
                         out_ref,
                         k_scr, v_scr):
    H = num_heads
    xq = xq_ref[0]                                  # (TQ, D) f32 — query tile (also residual)
    TQ, D = xq.shape
    S = xkv_ref.shape[1]
    dk = D // H

    # ---- K/V cache: project the FULL sequence once per batch element (t == 0 only). ----
    # One wide (S, D) @ (D, 2D) matmul (good MXU N), then split per head into VMEM scratch.
    @pl.when(pl.program_id(1) == 0)
    def _build_kv():
        xkv = xkv_ref[0]                                                   # (S, D) bf16
        kv = jnp.dot(xkv, wkv_ref[...],
                     preferred_element_type=jnp.float32) + bkv_ref[...]    # (S, 2D) f32
        kv = kv.astype(jnp.bfloat16)
        for h in range(H):
            k_scr[h] = kv[:, h * dk:(h + 1) * dk]                          # (S, dk)
            v_scr[h] = kv[:, D + h * dk:D + (h + 1) * dk]                  # (S, dk)

    # ---- Q projection (per tile): one wide (TQ, D) @ (D, D) matmul, then head split. ----
    # 1/sqrt(dk) is folded into wq/bq at param-prep time.
    q2d = jnp.dot(xq.astype(jnp.bfloat16), wq_ref[...],
                  preferred_element_type=jnp.float32) + bq_ref[...]        # (TQ, D) f32
    q2d = q2d.astype(jnp.bfloat16)
    q = jnp.stack([q2d[:, h * dk:(h + 1) * dk] for h in range(H)], axis=0)  # (H, TQ, dk) bf16

    # ---- Attention scores + softmax (f32); normalization deferred to after the PV matmul. ----
    bias = bias_ref[0].astype(jnp.float32)                                 # (TQ, S): 0 / -1e9
    scores = jnp.einsum('htc,hsc->hts', q, k_scr[...],
                        preferred_element_type=jnp.float32)                # (H, TQ, S)
    scores = scores + bias[None]
    m = jnp.max(scores, axis=-1, keepdims=True)
    e = jnp.exp(scores - m)
    denom = jnp.sum(e, axis=-1, keepdims=True)                             # (H, TQ, 1) f32
    ctx = jnp.einsum('hts,hsc->htc', e.astype(jnp.bfloat16), v_scr[...],
                     preferred_element_type=jnp.float32)                   # (H, TQ, dk)
    ctx = ctx * pl.reciprocal(denom)   # exact; scales (H,TQ,dk), not (H,TQ,S)

    # ---- Output projection: lane-concat heads -> one (TQ, D) @ (D, D) MXU matmul. ----
    ctx2d = jnp.concatenate([ctx[h] for h in range(H)], axis=-1).astype(jnp.bfloat16)  # (TQ, D)
    attn = jnp.dot(ctx2d, wo_ref[...], preferred_element_type=jnp.float32) + bo_ref[...]

    # TODO(synk): nn.Dropout is identity at inference; no dropout applied in-kernel.

    def layer_norm(y, g, b):
        mu = jnp.mean(y, axis=-1, keepdims=True)
        var = jnp.mean((y - mu) ** 2, axis=-1, keepdims=True)
        return (y - mu) * jax.lax.rsqrt(var + eps) * g + b

    h1 = layer_norm(xq + attn, g1_ref[...], beta1_ref[...])                # (TQ, D) f32

    # ---- SwiGLU MLP: fused (D, 2F) first matmul; silu / gating in f32. ----
    Fdim = w3_ref.shape[0]
    h1_b = h1.astype(jnp.bfloat16)
    x12 = jnp.dot(h1_b, w12_ref[...], preferred_element_type=jnp.float32) + b12_ref[...]  # (TQ, 2F)
    x1 = x12[:, :Fdim]
    x2 = x12[:, Fdim:]
    hidden = (x1 * jax.nn.sigmoid(x1)) * x2
    ff = jnp.dot(hidden.astype(jnp.bfloat16), w3_ref[...],
                 preferred_element_type=jnp.float32) + b3_ref[...]

    out_ref[0] = layer_norm(h1 + ff, g2_ref[...], beta2_ref[...])


def prepare_params(p, num_heads):
    """One-time param prep: fold 1/sqrt(dk) into Wq/bq, fuse [Wk|Wv] and [W1|W2] for wide
    MXU matmuls, cast matmul weights to bf16 (halves weight DMA / VMEM)."""
    D = p["wq"].shape[0]
    assert D % num_heads == 0, "d_model must be divisible by num_heads"
    dk = D // num_heads
    scale = 1.0 / math.sqrt(dk)
    return dict(
        wq=(p["wq"] * scale).astype(jnp.bfloat16),
        bq=(p["bq"] * scale).astype(jnp.float32),
        wkv=jnp.concatenate([p["wk"], p["wv"]], axis=1).astype(jnp.bfloat16),   # (D, 2D)
        bkv=jnp.concatenate([p["bk"], p["bv"]], axis=1).astype(jnp.float32),    # (1, 2D)
        wo=p["wo"].astype(jnp.bfloat16), bo=p["bo"].astype(jnp.float32),
        g1=p["g1"], beta1=p["beta1"],
        w12=jnp.concatenate([p["w1"], p["w2"]], axis=1).astype(jnp.bfloat16),   # (D, 2F)
        b12=jnp.concatenate([p["b1"], p["b2"]], axis=1).astype(jnp.float32),    # (1, 2F)
        w3=p["w3"].astype(jnp.bfloat16), b3=p["b3"].astype(jnp.float32),
        g2=p["g2"], beta2=p["beta2"],
    )


def encoder_layer(x, mask, prep, num_heads, eps=1e-5):
    B, S, D = x.shape
    H = num_heads
    assert D % H == 0
    dk = D // H
    Fdim = prep["w3"].shape[0]

    # Per-generation VMEM budget: physical capacity minus headroom, capped at 112 MiB
    # (-> ~112 MiB on v5e/v6e, ~48 MiB on v7x).
    try:
        vmem_cap = int(pltpu.get_tpu_info().vmem_capacity_bytes)
    except Exception:
        vmem_cap = 64 * 1024 * 1024
    vmem_limit = int(min(max(vmem_cap - 16 * 1024 * 1024, 32 * 1024 * 1024),
                         112 * 1024 * 1024))

    # Largest query tile whose f32 score/exp block (~2*H*TQ*S*4 B) fits a rough 1/3 share of
    # the VMEM budget (bigger tiles on v5e/v6e, smaller on v7x).
    TQ = S
    for cand in (512, 256, 128, 64, 32, 16, 8):
        if S % cand == 0 and 2 * H * cand * S * 4 <= vmem_limit // 3:
            TQ = cand
            break
    nq = S // TQ
    # TODO(synk): for very long S the (H, TQ, S) score block should itself be KV-tiled with an
    # online (flash-style) softmax; not needed at these shapes.

    # Additive mask bias: 0 where kept, ~-1e9 where masked (bf16 halves the (S,S) DMA).
    bias = ((mask.astype(jnp.float32) - 1.0) * 1000000000.0).astype(jnp.bfloat16)
    # bf16 copy of x for the K/V path only; the query/residual tile stays f32.
    x_kv = x.astype(jnp.bfloat16)

    kernel = functools.partial(encoder_layer_kernel, H, eps)
    operands = (x, x_kv, bias,
                prep["wq"], prep["bq"], prep["wkv"], prep["bkv"], prep["wo"], prep["bo"],
                prep["g1"], prep["beta1"],
                prep["w12"], prep["b12"], prep["w3"], prep["b3"],
                prep["g2"], prep["beta2"])

    def run(single_buffer_weights):
        def wspec(shape):
            # Grid-invariant weights: DMA'd once; single-buffer them to halve weight VMEM.
            if single_buffer_weights:
                return pl.BlockSpec(shape, lambda b, t: (0,) * len(shape),
                                    pipeline_mode=pl.Buffered(1))
            return pl.BlockSpec(shape, lambda b, t: (0,) * len(shape))

        in_specs = [
            pl.BlockSpec((1, TQ, D), lambda b, t: (b, t, 0)),   # x: query/residual tile (f32)
            pl.BlockSpec((1, S, D),  lambda b, t: (b, 0, 0)),   # x: full sequence (bf16, K/V src)
            pl.BlockSpec((1, TQ, S), lambda b, t: (b, t, 0)),   # additive mask bias (bf16)
            wspec((D, D)), wspec((1, D)),            # wq, bq (1/sqrt(dk) folded)
            wspec((D, 2 * D)), wspec((1, 2 * D)),    # wkv, bkv (fused K|V)
            wspec((D, D)), wspec((1, D)),            # wo, bo
            wspec((1, D)), wspec((1, D)),            # ln1 gamma, beta
            wspec((D, 2 * Fdim)), wspec((1, 2 * Fdim)),   # w12, b12 (fused w1|w2)
            wspec((Fdim, D)), wspec((1, D)),         # w3, b3
            wspec((1, D)), wspec((1, D)),            # ln2 gamma, beta
        ]
        grid_spec = pltpu.PrefetchScalarGridSpec(
            num_scalar_prefetch=0,
            grid=(B, nq),
            in_specs=in_specs,
            out_specs=pl.BlockSpec((1, TQ, D), lambda b, t: (b, t, 0)),
            scratch_shapes=[pltpu.VMEM((H, S, dk), jnp.bfloat16),   # K cache (per batch elem)
                            pltpu.VMEM((H, S, dk), jnp.bfloat16)],  # V cache
        )
        return pl.pallas_call(
            kernel,
            out_shape=jax.ShapeDtypeStruct((B, S, D), jnp.float32),
            grid_spec=grid_spec,
            compiler_params=pltpu.CompilerParams(
                # K/V scratch is carried across the query-tile axis -> "arbitrary";
                # batch axis stays "parallel" for megacore / 2-TC chips.
                dimension_semantics=("parallel", "arbitrary"),
                vmem_limit_bytes=vmem_limit,
            ),
        )(*operands)

    try:
        return run(True)
    except Exception:
        # Fallback if single-buffered (pipeline_mode=pl.Buffered(1)) specs are unsupported.
        return run(False)


def init_params(key, d_model, d_ff):
    ks = jax.random.split(key, 7)

    def linear(k, fan_in, fan_out):
        bound = 1.0 / math.sqrt(fan_in)
        kw, kb = jax.random.split(k)
        w = jax.random.uniform(kw, (fan_in, fan_out), jnp.float32, -bound, bound)
        b = jax.random.uniform(kb, (1, fan_out), jnp.float32, -bound, bound)
        return w, b

    wq, bq = linear(ks[0], d_model, d_model)
    wk, bk = linear(ks[1], d_model, d_model)
    wv, bv = linear(ks[2], d_model, d_model)
    wo, bo = linear(ks[3], d_model, d_model)
    w1, b1 = linear(ks[4], d_model, d_ff)
    w2, b2 = linear(ks[5], d_model, d_ff)
    w3, b3 = linear(ks[6], d_ff, d_model)
    return dict(
        wq=wq, bq=bq, wk=wk, bk=bk, wv=wv, bv=bv, wo=wo, bo=bo,
        w1=w1, b1=b1, w2=w2, b2=b2, w3=w3, b3=b3,
        g1=jnp.ones((1, d_model), jnp.float32), beta1=jnp.zeros((1, d_model), jnp.float32),
        g2=jnp.ones((1, d_model), jnp.float32), beta2=jnp.zeros((1, d_model), jnp.float32),
    )


def reference(x, mask, p, num_heads, eps=1e-5):
    """Pure-JAX f32 mirror of the PyTorch EncoderLayer.forward (eval mode)."""
    B, S, D = x.shape
    dk = D // num_heads

    def split_heads(y):
        return y.reshape(B, S, num_heads, dk).transpose(0, 2, 1, 3)

    q = split_heads(x @ p["wq"] + p["bq"])
    k = split_heads(x @ p["wk"] + p["bk"])
    v = split_heads(x @ p["wv"] + p["bv"])
    scores = (q @ k.transpose(0, 1, 3, 2)) / math.sqrt(dk)
    scores = jnp.where(mask[:, None, :, :] == 0, -1000000000.0, scores)
    probs = jax.nn.softmax(scores, axis=-1)
    attn = (probs @ v).transpose(0, 2, 1, 3).reshape(B, S, D)
    attn = attn @ p["wo"] + p["bo"]

    def ln(y, g, b):
        mu = jnp.mean(y, axis=-1, keepdims=True)
        var = jnp.mean((y - mu) ** 2, axis=-1, keepdims=True)
        return (y - mu) * jax.lax.rsqrt(var + eps) * g + b

    h1 = ln(x + attn, p["g1"], p["beta1"])
    x1 = h1 @ p["w1"] + p["b1"]
    x2 = h1 @ p["w2"] + p["b2"]
    ff = (jax.nn.silu(x1) * x2) @ p["w3"] + p["b3"]
    return ln(h1 + ff, p["g2"], p["beta2"])


if __name__ == "__main__":
    B, S, D, H, FF = 2, 8, 32, 4, 64

    key = jax.random.PRNGKey(0)
    kx, km, kp = jax.random.split(key, 3)

    x = jax.random.normal(kx, (B, S, D), jnp.float32)
    # random 0/1 mask, guaranteed at least the diagonal is kept
    mask = (jax.random.uniform(km, (B, S, S)) > 0.3).astype(jnp.float32)
    mask = jnp.maximum(mask, jnp.eye(S, dtype=jnp.float32)[None])

    params = init_params(kp, D, FF)
    prep = prepare_params(params, num_heads=H)   # one-time bf16 / fused-weight prep

    out = jax.block_until_ready(encoder_layer(x, mask, prep, num_heads=H))
    ref = jax.block_until_ready(reference(x, mask, params, num_heads=H))

    # bf16 matmul inputs (f32 accumulate) -> tolerance loosened vs. the f32 reference.
    np.testing.assert_allclose(np.asarray(out), np.asarray(ref), rtol=2e-2, atol=2e-2)
    print("KERNEL_OK")
</pallas_src>

<mosaic_0001>
module attributes {stable_mosaic.version = 11 : i64} {
  func.func @encoder_layer_kernel(%arg0: i32, %arg1: i32, %arg2: memref<1x8x32xf32, #tpu.memory_space<vmem>>, %arg3: memref<1x8x32xbf16, #tpu.memory_space<vmem>>, %arg4: memref<1x8x8xbf16, #tpu.memory_space<vmem>>, %arg5: memref<32x32xbf16, #tpu.memory_space<vmem>>, %arg6: memref<1x32xf32, #tpu.memory_space<vmem>>, %arg7: memref<32x64xbf16, #tpu.memory_space<vmem>>, %arg8: memref<1x64xf32, #tpu.memory_space<vmem>>, %arg9: memref<32x32xbf16, #tpu.memory_space<vmem>>, %arg10: memref<1x32xf32, #tpu.memory_space<vmem>>, %arg11: memref<1x32xf32, #tpu.memory_space<vmem>>, %arg12: memref<1x32xf32, #tpu.memory_space<vmem>>, %arg13: memref<32x128xbf16, #tpu.memory_space<vmem>>, %arg14: memref<1x128xf32, #tpu.memory_space<vmem>>, %arg15: memref<64x32xbf16, #tpu.memory_space<vmem>>, %arg16: memref<1x32xf32, #tpu.memory_space<vmem>>, %arg17: memref<1x32xf32, #tpu.memory_space<vmem>>, %arg18: memref<1x32xf32, #tpu.memory_space<vmem>>, %arg19: memref<1x8x32xf32, #tpu.memory_space<vmem>>, %arg20: memref<4x8x8xbf16, #tpu.memory_space<vmem>>, %arg21: memref<4x8x8xbf16, #tpu.memory_space<vmem>>) attributes {dimension_semantics = [#tpu.dimension_semantics<parallel>, #tpu.dimension_semantics<arbitrary>], iteration_bounds = array<i64: 2, 1>, scalar_prefetch = 0 : i64, scratch_operands = 2 : i64, tpu.core_type = #tpu.core_type<tc>, window_params = [{transform_indices = @transform_0, window_bounds = array<i64: 1, 8, 32>}, {transform_indices = @transform_1, window_bounds = array<i64: 1, 8, 32>}, {transform_indices = @transform_2, window_bounds = array<i64: 1, 8, 8>}, {pipeline_mode = #tpu.pipeline_mode<synchronous>, transform_indices = @transform_3, window_bounds = array<i64: 32, 32>}, {pipeline_mode = #tpu.pipeline_mode<synchronous>, transform_indices = @transform_4, window_bounds = array<i64: 1, 32>}, {pipeline_mode = #tpu.pipeline_mode<synchronous>, transform_indices = @transform_5, window_bounds = array<i64: 32, 64>}, {pipeline_mode = #tpu.pipeline_mode<synchronous>, transform_indices = @transform_6, window_bounds = array<i64: 1, 64>}, {pipeline_mode = #tpu.pipeline_mode<synchronous>, transform_indices = @transform_7, window_bounds = array<i64: 32, 32>}, {pipeline_mode = #tpu.pipeline_mode<synchronous>, transform_indices = @transform_8, window_bounds = array<i64: 1, 32>}, {pipeline_mode = #tpu.pipeline_mode<synchronous>, transform_indices = @transform_9, window_bounds = array<i64: 1, 32>}, {pipeline_mode = #tpu.pipeline_mode<synchronous>, transform_indices = @transform_10, window_bounds = array<i64: 1, 32>}, {pipeline_mode = #tpu.pipeline_mode<synchronous>, transform_indices = @transform_11, window_bounds = array<i64: 32, 128>}, {pipeline_mode = #tpu.pipeline_mode<synchronous>, transform_indices = @transform_12, window_bounds = array<i64: 1, 128>}, {pipeline_mode = #tpu.pipeline_mode<synchronous>, transform_indices = @transform_13, window_bounds = array<i64: 64, 32>}, {pipeline_mode = #tpu.pipeline_mode<synchronous>, transform_indices = @transform_14, window_bounds = array<i64: 1, 32>}, {pipeline_mode = #tpu.pipeline_mode<synchronous>, transform_indices = @transform_15, window_bounds = array<i64: 1, 32>}, {pipeline_mode = #tpu.pipeline_mode<synchronous>, transform_indices = @transform_16, window_bounds = array<i64: 1, 32>}, {transform_indices = @transform_17, window_bounds = array<i64: 1, 8, 32>}]} {
    %c0 = arith.constant 0 : index
    %c0_0 = arith.constant 0 : index
    %c0_1 = arith.constant 0 : index
    %0 = vector.load %arg2[%c0, %c0_0, %c0_1] : memref<1x8x32xf32, #tpu.memory_space<vmem>>, vector<1x8x32xf32>
    %1 = vector.shape_cast %0 : vector<1x8x32xf32> to vector<8x32xf32>
    %c0_i32 = arith.constant 0 : i32
    %2 = arith.cmpi eq, %arg1, %c0_i32 : i32
    %3 = arith.extui %2 : i1 to i32
    %c0_i32_2 = arith.constant 0 : i32
    %4 = arith.cmpi ne, %3, %c0_i32_2 : i32
    scf.if %4 {
      %c0_57 = arith.constant 0 : index
      %c0_58 = arith.constant 0 : index
      %c0_59 = arith.constant 0 : index
      %131 = vector.load %arg3[%c0_57, %c0_58, %c0_59] : memref<1x8x32xbf16, #tpu.memory_space<vmem>>, vector<1x8x32xbf16>
      %132 = vector.shape_cast %131 : vector<1x8x32xbf16> to vector<8x32xbf16>
      %c0_60 = arith.constant 0 : index
      %c0_61 = arith.constant 0 : index
      %133 = vector.load %arg7[%c0_60, %c0_61] : memref<32x64xbf16, #tpu.memory_space<vmem>>, vector<32x64xbf16>
      %cst_62 = arith.constant dense<0.000000e+00> : vector<8x64xf32>
      %134 = tpu.matmul %132, %133, %cst_62 {dimension_numbers = #tpu.dot_dimension_numbers<[1], [0], [0], [1], [0, 0, 1, 1], [], []>} : vector<8x32xbf16>, vector<32x64xbf16>, vector<8x64xf32> -> vector<8x64xf32>
      %c0_63 = arith.constant 0 : index
      %c0_64 = arith.constant 0 : index
      %135 = vector.load %arg8[%c0_63, %c0_64] : memref<1x64xf32, #tpu.memory_space<vmem>>, vector<1x64xf32>
      %136 = vector.broadcast %135 : vector<1x64xf32> to vector<8x64xf32>
      %137 = arith.addf %134, %136 : vector<8x64xf32>
      %138 = arith.truncf %137 : vector<8x64xf32> to vector<8x64xbf16>
      %139 = vector.extract_strided_slice %138 {offsets = [0, 0], sizes = [8, 8], strides = [1, 1]} : vector<8x64xbf16> to vector<8x8xbf16>
      %c0_65 = arith.constant 0 : index
      %c0_66 = arith.constant 0 : index
      %c0_67 = arith.constant 0 : index
      %140 = vector.load %arg20[%c0_65, %c0_66, %c0_67] : memref<4x8x8xbf16, #tpu.memory_space<vmem>>, vector<1x8x8xbf16>
      %141 = vector.shape_cast %140 : vector<1x8x8xbf16> to vector<8x8xbf16>
      %142 = vector.shape_cast %139 : vector<8x8xbf16> to vector<1x8x8xbf16>
      tpu.vector_store %arg20[%c0_65, %c0_66, %c0_67], %142 {strides = array<i32>} : memref<4x8x8xbf16, #tpu.memory_space<vmem>>, vector<1x8x8xbf16>,
      %143 = vector.extract_strided_slice %138 {offsets = [0, 32], sizes = [8, 8], strides = [1, 1]} : vector<8x64xbf16> to vector<8x8xbf16>
      %c0_68 = arith.constant 0 : index
      %c0_69 = arith.constant 0 : index
      %c0_70 = arith.constant 0 : index
      %144 = vector.load %arg21[%c0_68, %c0_69, %c0_70] : memref<4x8x8xbf16, #tpu.memory_space<vmem>>, vector<1x8x8xbf16>
      %145 = vector.shape_cast %144 : vector<1x8x8xbf16> to vector<8x8xbf16>
      %146 = vector.shape_cast %143 : vector<8x8xbf16> to vector<1x8x8xbf16>
      tpu.vector_store %arg21[%c0_68, %c0_69, %c0_70], %146 {strides = array<i32>} : memref<4x8x8xbf16, #tpu.memory_space<vmem>>, vector<1x8x8xbf16>,
      %147 = vector.extract_strided_slice %138 {offsets = [0, 8], sizes = [8, 8], strides = [1, 1]} : vector<8x64xbf16> to vector<8x8xbf16>
      %c1 = arith.constant 1 : index
      %c0_71 = arith.constant 0 : index
      %c0_72 = arith.constant 0 : index
      %148 = vector.load %arg20[%c1, %c0_71, %c0_72] : memref<4x8x8xbf16, #tpu.memory_space<vmem>>, vector<1x8x8xbf16>
      %149 = vector.shape_cast %148 : vector<1x8x8xbf16> to vector<8x8xbf16>
      %150 = vector.shape_cast %147 : vector<8x8xbf16> to vector<1x8x8xbf16>
      tpu.vector_store %arg20[%c1, %c0_71, %c0_72], %150 {strides = array<i32>} : memref<4x8x8xbf16, #tpu.memory_space<vmem>>, vector<1x8x8xbf16>,
      %151 = vector.extract_strided_slice %138 {offsets = [0, 40], sizes = [8, 8], strides = [1, 1]} : vector<8x64xbf16> to vector<8x8xbf16>
      %c1_73 = arith.constant 1 : index
      %c0_74 = arith.constant 0 : index
      %c0_75 = arith.constant 0 : index
      %152 = vector.load %arg21[%c1_73, %c0_74, %c0_75] : memref<4x8x8xbf16, #tpu.memory_space<vmem>>, vector<1x8x8xbf16>
      %153 = vector.shape_cast %152 : vector<1x8x8xbf16> to vector<8x8xbf16>
      %154 = vector.shape_cast %151 : vector<8x8xbf16> to vector<1x8x8xbf16>
      tpu.vector_store %arg21[%c1_73, %c0_74, %c0_75], %154 {strides = array<i32>} : memref<4x8x8xbf16, #tpu.memory_space<vmem>>, vector<1x8x8xbf16>,
      %155 = vector.extract_strided_slice %138 {offsets = [0, 16], sizes = [8, 8], strides = [1, 1]} : vector<8x64xbf16> to vector<8x8xbf16>
      %c2 = arith.constant 2 : index
      %c0_76 = arith.constant 0 : index
      %c0_77 = arith.constant 0 : index
      %156 = vector.load %arg20[%c2, %c0_76, %c0_77] : memref<4x8x8xbf16, #tpu.memory_space<vmem>>, vector<1x8x8xbf16>
      %157 = vector.shape_cast %156 : vector<1x8x8xbf16> to vector<8x8xbf16>
      %158 = vector.shape_cast %155 : vector<8x8xbf16> to vector<1x8x8xbf16>
      tpu.vector_store %arg20[%c2, %c0_76, %c0_77], %158 {strides = array<i32>} : memref<4x8x8xbf16, #tpu.memory_space<vmem>>, vector<1x8x8xbf16>,
      %159 = vector.extract_strided_slice %138 {offsets = [0, 48], sizes = [8, 8], strides = [1, 1]} : vector<8x64xbf16> to vector<8x8xbf16>
      %c2_78 = arith.constant 2 : index
      %c0_79 = arith.constant 0 : index
      %c0_80 = arith.constant 0 : index
      %160 = vector.load %arg21[%c2_78, %c0_79, %c0_80] : memref<4x8x8xbf16, #tpu.memory_space<vmem>>, vector<1x8x8xbf16>
      %161 = vector.shape_cast %160 : vector<1x8x8xbf16> to vector<8x8xbf16>
      %162 = vector.shape_cast %159 : vector<8x8xbf16> to vector<1x8x8xbf16>
      tpu.vector_store %arg21[%c2_78, %c0_79, %c0_80], %162 {strides = array<i32>} : memref<4x8x8xbf16, #tpu.memory_space<vmem>>, vector<1x8x8xbf16>,
      %163 = vector.extract_strided_slice %138 {offsets = [0, 24], sizes = [8, 8], strides = [1, 1]} : vector<8x64xbf16> to vector<8x8xbf16>
      %c3 = arith.constant 3 : index
      %c0_81 = arith.constant 0 : index
      %c0_82 = arith.constant 0 : index
      %164 = vector.load %arg20[%c3, %c0_81, %c0_82] : memref<4x8x8xbf16, #tpu.memory_space<vmem>>, vector<1x8x8xbf16>
      %165 = vector.shape_cast %164 : vector<1x8x8xbf16> to vector<8x8xbf16>
      %166 = vector.shape_cast %163 : vector<8x8xbf16> to vector<1x8x8xbf16>
      tpu.vector_store %arg20[%c3, %c0_81, %c0_82], %166 {strides = array<i32>} : memref<4x8x8xbf16, #tpu.memory_space<vmem>>, vector<1x8x8xbf16>,
      %167 = vector.extract_strided_slice %138 {offsets = [0, 56], sizes = [8, 8], strides = [1, 1]} : vector<8x64xbf16> to vector<8x8xbf16>
      %c3_83 = arith.constant 3 : index
      %c0_84 = arith.constant 0 : index
      %c0_85 = arith.constant 0 : index
      %168 = vector.load %arg21[%c3_83, %c0_84, %c0_85] : memref<4x8x8xbf16, #tpu.memory_space<vmem>>, vector<1x8x8xbf16>
      %169 = vector.shape_cast %168 : vector<1x8x8xbf16> to vector<8x8xbf16>
      %170 = vector.shape_cast %167 : vector<8x8xbf16> to vector<1x8x8xbf16>
      tpu.vector_store %arg21[%c3_83, %c0_84, %c0_85], %170 {strides = array<i32>} : memref<4x8x8xbf16, #tpu.memory_space<vmem>>, vector<1x8x8xbf16>,
    } else {
    }
    %5 = arith.truncf %1 : vector<8x32xf32> to vector<8x32xbf16>
    %c0_3 = arith.constant 0 : index
    %c0_4 = arith.constant 0 : index
    %6 = vector.load %arg5[%c0_3, %c0_4] : memref<32x32xbf16, #tpu.memory_space<vmem>>, vector<32x32xbf16>
    %cst = arith.constant dense<0.000000e+00> : vector<8x32xf32>
    %7 = tpu.matmul %5, %6, %cst {dimension_numbers = #tpu.dot_dimension_numbers<[1], [0], [0], [1], [0, 0, 1, 1], [], []>} : vector<8x32xbf16>, vector<32x32xbf16>, vector<8x32xf32> -> vector<8x32xf32>
    %c0_5 = arith.constant 0 : index
    %c0_6 = arith.constant 0 : index
    %8 = vector.load %arg6[%c0_5, %c0_6] : memref<1x32xf32, #tpu.memory_space<vmem>>, vector<1x32xf32>
    %9 = vector.broadcast %8 : vector<1x32xf32> to vector<8x32xf32>
    %10 = arith.addf %7, %9 : vector<8x32xf32>
    %11 = arith.truncf %10 : vector<8x32xf32> to vector<8x32xbf16>
    %12 = vector.extract_strided_slice %11 {offsets = [0, 0], sizes = [8, 8], strides = [1, 1]} : vector<8x32xbf16> to vector<8x8xbf16>
    %13 = vector.extract_strided_slice %11 {offsets = [0, 8], sizes = [8, 8], strides = [1, 1]} : vector<8x32xbf16> to vector<8x8xbf16>
    %14 = vector.extract_strided_slice %11 {offsets = [0, 16], sizes = [8, 8], strides = [1, 1]} : vector<8x32xbf16> to vector<8x8xbf16>
    %15 = vector.extract_strided_slice %11 {offsets = [0, 24], sizes = [8, 8], strides = [1, 1]} : vector<8x32xbf16> to vector<8x8xbf16>
    %16 = vector.shape_cast %12 : vector<8x8xbf16> to vector<1x8x8xbf16>
    %17 = vector.shape_cast %13 : vector<8x8xbf16> to vector<1x8x8xbf16>
    %18 = vector.shape_cast %14 : vector<8x8xbf16> to vector<1x8x8xbf16>
    %19 = vector.shape_cast %15 : vector<8x8xbf16> to vector<1x8x8xbf16>
    %20 = tpu.concatenate %16, %17, %18, %19 in 0 : vector<1x8x8xbf16>, vector<1x8x8xbf16>, vector<1x8x8xbf16>, vector<1x8x8xbf16> -> vector<4x8x8xbf16>
    %c0_7 = arith.constant 0 : index
    %c0_8 = arith.constant 0 : index
    %c0_9 = arith.constant 0 : index
    %21 = vector.load %arg4[%c0_7, %c0_8, %c0_9] : memref<1x8x8xbf16, #tpu.memory_space<vmem>>, vector<1x8x8xbf16>
    %22 = vector.shape_cast %21 : vector<1x8x8xbf16> to vector<8x8xbf16>
    %23 = arith.extf %22 : vector<8x8xbf16> to vector<8x8xf32>
    %c0_10 = arith.constant 0 : index
    %c0_11 = arith.constant 0 : index
    %c0_12 = arith.constant 0 : index
    %24 = vector.load %arg20[%c0_10, %c0_11, %c0_12] : memref<4x8x8xbf16, #tpu.memory_space<vmem>>, vector<4x8x8xbf16>
    "tpu.trace_start"() <{level = 10 : i32, message = "htc,hsc->hts"}> : () -> ()
    %cst_13 = arith.constant dense<0.000000e+00> : vector<4x8x8xf32>
    %25 = tpu.matmul %20, %24, %cst_13 {dimension_numbers = #tpu.dot_dimension_numbers<[2], [2], [1], [1], [0, 0, 0, 1, 1, 1], [0], [0]>} : vector<4x8x8xbf16>, vector<4x8x8xbf16>, vector<4x8x8xf32> -> vector<4x8x8xf32>
    "tpu.trace_stop"() : () -> ()
    %26 = vector.shape_cast %23 : vector<8x8xf32> to vector<1x8x8xf32>
    %27 = vector.broadcast %26 : vector<1x8x8xf32> to vector<4x8x8xf32>
    %28 = arith.addf %25, %27 : vector<4x8x8xf32>
    %cst_14 = arith.constant dense<0xFF800000> : vector<4x8xf32>
    %29 = vector.multi_reduction <maximumf>, %28, %cst_14 [2] : vector<4x8x8xf32> to vector<4x8xf32>
    %30 = vector.shape_cast %29 : vector<4x8xf32> to vector<4x8x1xf32>
    %31 = vector.broadcast %30 : vector<4x8x1xf32> to vector<4x8x8xf32>
    %32 = arith.subf %28, %31 : vector<4x8x8xf32>
    %33 = math.exp %32 : vector<4x8x8xf32>
    %cst_15 = arith.constant dense<0.000000e+00> : vector<4x8xf32>
    %34 = vector.multi_reduction <add>, %33, %cst_15 [2] : vector<4x8x8xf32> to vector<4x8xf32>
    %35 = vector.shape_cast %34 : vector<4x8xf32> to vector<4x8x1xf32>
    %36 = arith.truncf %33 : vector<4x8x8xf32> to vector<4x8x8xbf16>
    %c0_16 = arith.constant 0 : index
    %c0_17 = arith.constant 0 : index
    %c0_18 = arith.constant 0 : index
    %37 = vector.load %arg21[%c0_16, %c0_17, %c0_18] : memref<4x8x8xbf16, #tpu.memory_space<vmem>>, vector<4x8x8xbf16>
    "tpu.trace_start"() <{level = 10 : i32, message = "hts,hsc->htc"}> : () -> ()
    %cst_19 = arith.constant dense<0.000000e+00> : vector<4x8x8xf32>
    %38 = tpu.matmul %36, %37, %cst_19 {dimension_numbers = #tpu.dot_dimension_numbers<[2], [1], [1], [2], [0, 0, 0, 1, 1, 2], [0], [0]>} : vector<4x8x8xbf16>, vector<4x8x8xbf16>, vector<4x8x8xf32> -> vector<4x8x8xf32>
    "tpu.trace_stop"() : () -> ()
    %39 = tpu.reciprocal %35 : vector<4x8x1xf32> -> vector<4x8x1xf32>
    %40 = vector.broadcast %39 : vector<4x8x1xf32> to vector<4x8x8xf32>
    %41 = arith.mulf %38, %40 : vector<4x8x8xf32>
    %42 = vector.extract_strided_slice %41 {offsets = [0, 0, 0], sizes = [1, 8, 8], strides = [1, 1, 1]} : vector<4x8x8xf32> to vector<1x8x8xf32>
    %43 = vector.shape_cast %42 : vector<1x8x8xf32> to vector<8x8xf32>
    %44 = vector.extract_strided_slice %41 {offsets = [1, 0, 0], sizes = [1, 8, 8], strides = [1, 1, 1]} : vector<4x8x8xf32> to vector<1x8x8xf32>
    %45 = vector.shape_cast %44 : vector<1x8x8xf32> to vector<8x8xf32>
    %46 = vector.extract_strided_slice %41 {offsets = [2, 0, 0], sizes = [1, 8, 8], strides = [1, 1, 1]} : vector<4x8x8xf32> to vector<1x8x8xf32>
    %47 = vector.shape_cast %46 : vector<1x8x8xf32> to vector<8x8xf32>
    %48 = vector.extract_strided_slice %41 {offsets = [3, 0, 0], sizes = [1, 8, 8], strides = [1, 1, 1]} : vector<4x8x8xf32> to vector<1x8x8xf32>
    %49 = vector.shape_cast %48 : vector<1x8x8xf32> to vector<8x8xf32>
    %50 = tpu.concatenate %43, %45, %47, %49 in 1 : vector<8x8xf32>, vector<8x8xf32>, vector<8x8xf32>, vector<8x8xf32> -> vector<8x32xf32>
    %51 = arith.truncf %50 : vector<8x32xf32> to vector<8x32xbf16>
    %c0_20 = arith.constant 0 : index
    %c0_21 = arith.constant 0 : index
    %52 = vector.load %arg9[%c0_20, %c0_21] : memref<32x32xbf16, #tpu.memory_space<vmem>>, vector<32x32xbf16>
    %cst_22 = arith.constant dense<0.000000e+00> : vector<8x32xf32>
    %53 = tpu.matmul %51, %52, %cst_22 {dimension_numbers = #tpu.dot_dimension_numbers<[1], [0], [0], [1], [0, 0, 1, 1], [], []>} : vector<8x32xbf16>, vector<32x32xbf16>, vector<8x32xf32> -> vector<8x32xf32>
    %c0_23 = arith.constant 0 : index
    %c0_24 = arith.constant 0 : index
    %54 = vector.load %arg10[%c0_23, %c0_24] : memref<1x32xf32, #tpu.memory_space<vmem>>, vector<1x32xf32>
    %55 = vector.broadcast %54 : vector<1x32xf32> to vector<8x32xf32>
    %56 = arith.addf %53, %55 : vector<8x32xf32>
    %57 = arith.addf %1, %56 : vector<8x32xf32>
    %c0_25 = arith.constant 0 : index
    %c0_26 = arith.constant 0 : index
    %58 = vector.load %arg11[%c0_25, %c0_26] : memref<1x32xf32, #tpu.memory_space<vmem>>, vector<1x32xf32>
    %c0_27 = arith.constant 0 : index
    %c0_28 = arith.constant 0 : index
    %59 = vector.load %arg12[%c0_27, %c0_28] : memref<1x32xf32, #tpu.memory_space<vmem>>, vector<1x32xf32>
    %cst_29 = arith.constant dense<0.000000e+00> : vector<8xf32>
    %60 = vector.multi_reduction <add>, %57, %cst_29 [1] : vector<8x32xf32> to vector<8xf32>
    %61 = vector.shape_cast %60 : vector<8xf32> to vector<8x1xf32>
    %cst_30 = arith.constant 3.200000e+01 : f32
    %62 = vector.broadcast %cst_30 : f32 to vector<8x1xf32>
    %63 = arith.divf %61, %62 : vector<8x1xf32>
    %64 = vector.broadcast %63 : vector<8x1xf32> to vector<8x32xf32>
    %65 = arith.subf %57, %64 : vector<8x32xf32>
    %66 = arith.mulf %65, %65 : vector<8x32xf32>
    %cst_31 = arith.constant dense<0.000000e+00> : vector<8xf32>
    %67 = vector.multi_reduction <add>, %66, %cst_31 [1] : vector<8x32xf32> to vector<8xf32>
    %68 = vector.shape_cast %67 : vector<8xf32> to vector<8x1xf32>
    %cst_32 = arith.constant 3.200000e+01 : f32
    %69 = vector.broadcast %cst_32 : f32 to vector<8x1xf32>
    %70 = arith.divf %68, %69 : vector<8x1xf32>
    %71 = vector.broadcast %63 : vector<8x1xf32> to vector<8x32xf32>
    %72 = arith.subf %57, %71 : vector<8x32xf32>
    %cst_33 = arith.constant 9.99999974E-6 : f32
    %73 = vector.broadcast %cst_33 : f32 to vector<8x1xf32>
    %74 = arith.addf %70, %73 : vector<8x1xf32>
    %75 = math.rsqrt %74 : vector<8x1xf32>
    %76 = vector.broadcast %75 : vector<8x1xf32> to vector<8x32xf32>
    %77 = arith.mulf %72, %76 : vector<8x32xf32>
    %78 = vector.broadcast %58 : vector<1x32xf32> to vector<8x32xf32>
    %79 = arith.mulf %77, %78 : vector<8x32xf32>
    %80 = vector.broadcast %59 : vector<1x32xf32> to vector<8x32xf32>
    %81 = arith.addf %79, %80 : vector<8x32xf32>
    %82 = arith.truncf %81 : vector<8x32xf32> to vector<8x32xbf16>
    %c0_34 = arith.constant 0 : index
    %c0_35 = arith.constant 0 : index
    %83 = vector.load %arg13[%c0_34, %c0_35] : memref<32x128xbf16, #tpu.memory_space<vmem>>, vector<32x128xbf16>
    %cst_36 = arith.constant dense<0.000000e+00> : vector<8x128xf32>
    %84 = tpu.matmul %82, %83, %cst_36 {dimension_numbers = #tpu.dot_dimension_numbers<[1], [0], [0], [1], [0, 0, 1, 1], [], []>} : vector<8x32xbf16>, vector<32x128xbf16>, vector<8x128xf32> -> vector<8x128xf32>
    %c0_37 = arith.constant 0 : index
    %c0_38 = arith.constant 0 : index
    %85 = vector.load %arg14[%c0_37, %c0_38] : memref<1x128xf32, #tpu.memory_space<vmem>>, vector<1x128xf32>
    %86 = vector.broadcast %85 : vector<1x128xf32> to vector<8x128xf32>
    %87 = arith.addf %84, %86 : vector<8x128xf32>
    %88 = vector.extract_strided_slice %87 {offsets = [0, 0], sizes = [8, 64], strides = [1, 1]} : vector<8x128xf32> to vector<8x64xf32>
    %89 = vector.extract_strided_slice %87 {offsets = [0, 64], sizes = [8, 64], strides = [1, 1]} : vector<8x128xf32> to vector<8x64xf32>
    %90 = arith.negf %88 : vector<8x64xf32>
    %91 = math.exp %90 : vector<8x64xf32>
    %cst_39 = arith.constant 1.000000e+00 : f32
    %92 = vector.broadcast %cst_39 : f32 to vector<8x64xf32>
    %93 = arith.addf %92, %91 : vector<8x64xf32>
    %94 = arith.divf %92, %93 : vector<8x64xf32>
    %95 = arith.mulf %88, %94 : vector<8x64xf32>
    %96 = arith.mulf %95, %89 : vector<8x64xf32>
    %97 = arith.truncf %96 : vector<8x64xf32> to vector<8x64xbf16>
    %c0_40 = arith.constant 0 : index
    %c0_41 = arith.constant 0 : index
    %98 = vector.load %arg15[%c0_40, %c0_41] : memref<64x32xbf16, #tpu.memory_space<vmem>>, vector<64x32xbf16>
    %cst_42 = arith.constant dense<0.000000e+00> : vector<8x32xf32>
    %99 = tpu.matmul %97, %98, %cst_42 {dimension_numbers = #tpu.dot_dimension_numbers<[1], [0], [0], [1], [0, 0, 1, 1], [], []>} : vector<8x64xbf16>, vector<64x32xbf16>, vector<8x32xf32> -> vector<8x32xf32>
    %c0_43 = arith.constant 0 : index
    %c0_44 = arith.constant 0 : index
    %100 = vector.load %arg16[%c0_43, %c0_44] : memref<1x32xf32, #tpu.memory_space<vmem>>, vector<1x32xf32>
    %101 = vector.broadcast %100 : vector<1x32xf32> to vector<8x32xf32>
    %102 = arith.addf %99, %101 : vector<8x32xf32>
    %103 = arith.addf %81, %102 : vector<8x32xf32>
    %c0_45 = arith.constant 0 : index
    %c0_46 = arith.constant 0 : index
    %104 = vector.load %arg17[%c0_45, %c0_46] : memref<1x32xf32, #tpu.memory_space<vmem>>, vector<1x32xf32>
    %c0_47 = arith.constant 0 : index
    %c0_48 = arith.constant 0 : index
    %105 = vector.load %arg18[%c0_47, %c0_48] : memref<1x32xf32, #tpu.memory_space<vmem>>, vector<1x32xf32>
    %cst_49 = arith.constant dense<0.000000e+00> : vector<8xf32>
    %106 = vector.multi_reduction <add>, %103, %cst_49 [1] : vector<8x32xf32> to vector<8xf32>
    %107 = vector.shape_cast %106 : vector<8xf32> to vector<8x1xf32>
    %cst_50 = arith.constant 3.200000e+01 : f32
    %108 = vector.broadcast %cst_50 : f32 to vector<8x1xf32>
    %109 = arith.divf %107, %108 : vector<8x1xf32>
    %110 = vector.broadcast %109 : vector<8x1xf32> to vector<8x32xf32>
    %111 = arith.subf %103, %110 : vector<8x32xf32>
    %112 = arith.mulf %111, %111 : vector<8x32xf32>
    %cst_51 = arith.constant dense<0.000000e+00> : vector<8xf32>
    %113 = vector.multi_reduction <add>, %112, %cst_51 [1] : vector<8x32xf32> to vector<8xf32>
    %114 = vector.shape_cast %113 : vector<8xf32> to vector<8x1xf32>
    %cst_52 = arith.constant 3.200000e+01 : f32
    %115 = vector.broadcast %cst_52 : f32 to vector<8x1xf32>
    %116 = arith.divf %114, %115 : vector<8x1xf32>
    %117 = vector.broadcast %109 : vector<8x1xf32> to vector<8x32xf32>
    %118 = arith.subf %103, %117 : vector<8x32xf32>
    %cst_53 = arith.constant 9.99999974E-6 : f32
    %119 = vector.broadcast %cst_53 : f32 to vector<8x1xf32>
    %120 = arith.addf %116, %119 : vector<8x1xf32>
    %121 = math.rsqrt %120 : vector<8x1xf32>
    %122 = vector.broadcast %121 : vector<8x1xf32> to vector<8x32xf32>
    %123 = arith.mulf %118, %122 : vector<8x32xf32>
    %124 = vector.broadcast %104 : vector<1x32xf32> to vector<8x32xf32>
    %125 = arith.mulf %123, %124 : vector<8x32xf32>
    %126 = vector.broadcast %105 : vector<1x32xf32> to vector<8x32xf32>
    %127 = arith.addf %125, %126 : vector<8x32xf32>
    %c0_54 = arith.constant 0 : index
    %c0_55 = arith.constant 0 : index
    %c0_56 = arith.constant 0 : index
    %128 = vector.load %arg19[%c0_54, %c0_55, %c0_56] : memref<1x8x32xf32, #tpu.memory_space<vmem>>, vector<1x8x32xf32>
    %129 = vector.shape_cast %128 : vector<1x8x32xf32> to vector<8x32xf32>
    %130 = vector.shape_cast %127 : vector<8x32xf32> to vector<1x8x32xf32>
    tpu.vector_store %arg19[%c0_54, %c0_55, %c0_56], %130 {strides = array<i32>} : memref<1x8x32xf32, #tpu.memory_space<vmem>>, vector<1x8x32xf32>,
    return
  }
  func.func @transform_0(%arg0: i32, %arg1: i32) -> (i32, i32, i32) {
    %c0_i32 = arith.constant 0 : i32
    %c0_i32_0 = arith.constant 0 : i32
    return %arg0, %arg1, %c0_i32 : i32, i32, i32
  }
  func.func @transform_1(%arg0: i32, %arg1: i32) -> (i32, i32, i32) {
    %c0_i32 = arith.constant 0 : i32
    %c0_i32_0 = arith.constant 0 : i32
    %c0_i32_1 = arith.constant 0 : i32
    return %arg0, %c0_i32, %c0_i32_0 : i32, i32, i32
  }
  func.func @transform_2(%arg0: i32, %arg1: i32) -> (i32, i32, i32) {
    %c0_i32 = arith.constant 0 : i32
    %c0_i32_0 = arith.constant 0 : i32
    return %arg0, %arg1, %c0_i32 : i32, i32, i32
  }
  func.func @transform_3(%arg0: i32, %arg1: i32) -> (i32, i32) {
    %c0_i32 = arith.constant 0 : i32
    %c0_i32_0 = arith.constant 0 : i32
    %c0_i32_1 = arith.constant 0 : i32
    return %c0_i32, %c0_i32_0 : i32, i32
  }
  func.func @transform_4(%arg0: i32, %arg1: i32) -> (i32, i32) {
    %c0_i32 = arith.constant 0 : i32
    %c0_i32_0 = arith.constant 0 : i32
    %c0_i32_1 = arith.constant 0 : i32
    return %c0_i32, %c0_i32_0 : i32, i32
  }
  func.func @transform_5(%arg0: i32, %arg1: i32) -> (i32, i32) {
    %c0_i32 = arith.constant 0 : i32
    %c0_i32_0 = arith.constant 0 : i32
    %c0_i32_1 = arith.constant 0 : i32
    return %c0_i32, %c0_i32_0 : i32, i32
  }
  func.func @transform_6(%arg0: i32, %arg1: i32) -> (i32, i32) {
    %c0_i32 = arith.constant 0 : i32
    %c0_i32_0 = arith.constant 0 : i32
    %c0_i32_1 = arith.constant 0 : i32
    return %c0_i32, %c0_i32_0 : i32, i32
  }
  func.func @transform_7(%arg0: i32, %arg1: i32) -> (i32, i32) {
    %c0_i32 = arith.constant 0 : i32
    %c0_i32_0 = arith.constant 0 : i32
    %c0_i32_1 = arith.constant 0 : i32
    return %c0_i32, %c0_i32_0 : i32, i32
  }
  func.func @transform_8(%arg0: i32, %arg1: i32) -> (i32, i32) {
    %c0_i32 = arith.constant 0 : i32
    %c0_i32_0 = arith.constant 0 : i32
    %c0_i32_1 = arith.constant 0 : i32
    return %c0_i32, %c0_i32_0 : i32, i32
  }
  func.func @transform_9(%arg0: i32, %arg1: i32) -> (i32, i32) {
    %c0_i32 = arith.constant 0 : i32
    %c0_i32_0 = arith.constant 0 : i32
    %c0_i32_1 = arith.constant 0 : i32
    return %c0_i32, %c0_i32_0 : i32, i32
  }
  func.func @transform_10(%arg0: i32, %arg1: i32) -> (i32, i32) {
    %c0_i32 = arith.constant 0 : i32
    %c0_i32_0 = arith.constant 0 : i32
    %c0_i32_1 = arith.constant 0 : i32
    return %c0_i32, %c0_i32_0 : i32, i32
  }
  func.func @transform_11(%arg0: i32, %arg1: i32) -> (i32, i32) {
    %c0_i32 = arith.constant 0 : i32
    %c0_i32_0 = arith.constant 0 : i32
    %c0_i32_1 = arith.constant 0 : i32
    return %c0_i32, %c0_i32_0 : i32, i32
  }
  func.func @transform_12(%arg0: i32, %arg1: i32) -> (i32, i32) {
    %c0_i32 = arith.constant 0 : i32
    %c0_i32_0 = arith.constant 0 : i32
    %c0_i32_1 = arith.constant 0 : i32
    return %c0_i32, %c0_i32_0 : i32, i32
  }
  func.func @transform_13(%arg0: i32, %arg1: i32) -> (i32, i32) {
    %c0_i32 = arith.constant 0 : i32
    %c0_i32_0 = arith.constant 0 : i32
    %c0_i32_1 = arith.constant 0 : i32
    return %c0_i32, %c0_i32_0 : i32, i32
  }
  func.func @transform_14(%arg0: i32, %arg1: i32) -> (i32, i32) {
    %c0_i32 = arith.constant 0 : i32
    %c0_i32_0 = arith.constant 0 : i32
    %c0_i32_1 = arith.constant 0 : i32
    return %c0_i32, %c0_i32_0 : i32, i32
  }
  func.func @transform_15(%arg0: i32, %arg1: i32) -> (i32, i32) {
    %c0_i32 = arith.constant 0 : i32
    %c0_i32_0 = arith.constant 0 : i32
    %c0_i32_1 = arith.constant 0 : i32
    return %c0_i32, %c0_i32_0 : i32, i32
  }
  func.func @transform_16(%arg0: i32, %arg1: i32) -> (i32, i32) {
    %c0_i32 = arith.constant 0 : i32
    %c0_i32_0 = arith.constant 0 : i32
    %c0_i32_1 = arith.constant 0 : i32
    return %c0_i32, %c0_i32_0 : i32, i32
  }
  func.func @transform_17(%arg0: i32, %arg1: i32) -> (i32, i32, i32) {
    %c0_i32 = arith.constant 0 : i32
    %c0_i32_0 = arith.constant 0 : i32
    return %arg0, %arg1, %c0_i32 : i32, i32, i32
  }
}

module attributes {stable_mosaic.version = 11 : i64} {
  func.func @encoder_layer_kernel(%arg0: i32, %arg1: i32, %arg2: memref<1x8x32xf32, #tpu.memory_space<vmem>>, %arg3: memref<1x8x32xbf16, #tpu.memory_space<vmem>>, %arg4: memref<1x8x8xbf16, #tpu.memory_space<vmem>>, %arg5: memref<32x32xbf16, #tpu.memory_space<vmem>>, %arg6: memref<1x32xf32, #tpu.memory_space<vmem>>, %arg7: memref<32x64xbf16, #tpu.memory_space<vmem>>, %arg8: memref<1x64xf32, #tpu.memory_space<vmem>>, %arg9: memref<32x32xbf16, #tpu.memory_space<vmem>>, %arg10: memref<1x32xf32, #tpu.memory_space<vmem>>, %arg11: memref<1x32xf32, #tpu.memory_space<vmem>>, %arg12: memref<1x32xf32, #tpu.memory_space<vmem>>, %arg13: memref<32x128xbf16, #tpu.memory_space<vmem>>, %arg14: memref<1x128xf32, #tpu.memory_space<vmem>>, %arg15: memref<64x32xbf16, #tpu.memory_space<vmem>>, %arg16: memref<1x32xf32, #tpu.memory_space<vmem>>, %arg17: memref<1x32xf32, #tpu.memory_space<vmem>>, %arg18: memref<1x32xf32, #tpu.memory_space<vmem>>, %arg19: memref<1x8x32xf32, #tpu.memory_space<vmem>>, %arg20: memref<4x8x8xbf16, #tpu.memory_space<vmem>>, %arg21: memref<4x8x8xbf16, #tpu.memory_space<vmem>>) attributes {dimension_semantics = [#tpu.dimension_semantics<parallel>, #tpu.dimension_semantics<arbitrary>], iteration_bounds = array<i64: 2, 1>, scalar_prefetch = 0 : i64, scratch_operands = 2 : i64, tpu.core_type = #tpu.core_type<tc>, window_params = [{transform_indices = @transform_0, window_bounds = array<i64: 1, 8, 32>}, {transform_indices = @transform_1, window_bounds = array<i64: 1, 8, 32>}, {transform_indices = @transform_2, window_bounds = array<i64: 1, 8, 8>}, {pipeline_mode = #tpu.pipeline_mode<synchronous>, transform_indices = @transform_3, window_bounds = array<i64: 32, 32>}, {pipeline_mode = #tpu.pipeline_mode<synchronous>, transform_indices = @transform_4, window_bounds = array<i64: 1, 32>}, {pipeline_mode = #tpu.pipeline_mode<synchronous>, transform_indices = @transform_5, window_bounds = array<i64: 32, 64>}, {pipeline_mode = #tpu.pipeline_mode<synchronous>, transform_indices = @transform_6, window_bounds = array<i64: 1, 64>}, {pipeline_mode = #tpu.pipeline_mode<synchronous>, transform_indices = @transform_7, window_bounds = array<i64: 32, 32>}, {pipeline_mode = #tpu.pipeline_mode<synchronous>, transform_indices = @transform_8, window_bounds = array<i64: 1, 32>}, {pipeline_mode = #tpu.pipeline_mode<synchronous>, transform_indices = @transform_9, window_bounds = array<i64: 1, 32>}, {pipeline_mode = #tpu.pipeline_mode<synchronous>, transform_indices = @transform_10, window_bounds = array<i64: 1, 32>}, {pipeline_mode = #tpu.pipeline_mode<synchronous>, transform_indices = @transform_11, window_bounds = array<i64: 32, 128>}, {pipeline_mode = #tpu.pipeline_mode<synchronous>, transform_indices = @transform_12, window_bounds = array<i64: 1, 128>}, {pipeline_mode = #tpu.pipeline_mode<synchronous>, transform_indices = @transform_13, window_bounds = array<i64: 64, 32>}, {pipeline_mode = #tpu.pipeline_mode<synchronous>, transform_indices = @transform_14, window_bounds = array<i64: 1, 32>}, {pipeline_mode = #tpu.pipeline_mode<synchronous>, transform_indices = @transform_15, window_bounds = array<i64: 1, 32>}, {pipeline_mode = #tpu.pipeline_mode<synchronous>, transform_indices = @transform_16, window_bounds = array<i64: 1, 32>}, {transform_indices = @transform_17, window_bounds = array<i64: 1, 8, 32>}]} {
    %c0 = arith.constant 0 : index
    %c0_0 = arith.constant 0 : index
    %c0_1 = arith.constant 0 : index
    %0 = vector.load %arg2[%c0, %c0_0, %c0_1] : memref<1x8x32xf32, #tpu.memory_space<vmem>>, vector<1x8x32xf32>
    %1 = vector.shape_cast %0 : vector<1x8x32xf32> to vector<8x32xf32>
    %c0_i32 = arith.constant 0 : i32
    %2 = arith.cmpi eq, %arg1, %c0_i32 : i32
    %3 = arith.extui %2 : i1 to i32
    %c0_i32_2 = arith.constant 0 : i32
    %4 = arith.cmpi ne, %3, %c0_i32_2 : i32
    scf.if %4 {
      %c0_57 = arith.constant 0 : index
      %c0_58 = arith.constant 0 : index
      %c0_59 = arith.constant 0 : index
      %131 = vector.load %arg3[%c0_57, %c0_58, %c0_59] : memref<1x8x32xbf16, #tpu.memory_space<vmem>>, vector<1x8x32xbf16>
      %132 = vector.shape_cast %131 : vector<1x8x32xbf16> to vector<8x32xbf16>
      %c0_60 = arith.constant 0 : index
      %c0_61 = arith.constant 0 : index
      %133 = vector.load %arg7[%c0_60, %c0_61] : memref<32x64xbf16, #tpu.memory_space<vmem>>, vector<32x64xbf16>
      %cst_62 = arith.constant dense<0.000000e+00> : vector<8x64xf32>
      %134 = tpu.matmul %132, %133, %cst_62 {dimension_numbers = #tpu.dot_dimension_numbers<[1], [0], [0], [1], [0, 0, 1, 1], [], []>} : vector<8x32xbf16>, vector<32x64xbf16>, vector<8x64xf32> -> vector<8x64xf32>
      %c0_63 = arith.constant 0 : index
      %c0_64 = arith.constant 0 : index
      %135 = vector.load %arg8[%c0_63, %c0_64] : memref<1x64xf32, #tpu.memory_space<vmem>>, vector<1x64xf32>
      %136 = vector.broadcast %135 : vector<1x64xf32> to vector<8x64xf32>
      %137 = arith.addf %134, %136 : vector<8x64xf32>
      %138 = arith.truncf %137 : vector<8x64xf32> to vector<8x64xbf16>
      %139 = vector.extract_strided_slice %138 {offsets = [0, 0], sizes = [8, 8], strides = [1, 1]} : vector<8x64xbf16> to vector<8x8xbf16>
      %c0_65 = arith.constant 0 : index
      %c0_66 = arith.constant 0 : index
      %c0_67 = arith.constant 0 : index
      %140 = vector.load %arg20[%c0_65, %c0_66, %c0_67] : memref<4x8x8xbf16, #tpu.memory_space<vmem>>, vector<1x8x8xbf16>
      %141 = vector.shape_cast %140 : vector<1x8x8xbf16> to vector<8x8xbf16>
      %142 = vector.shape_cast %139 : vector<8x8xbf16> to vector<1x8x8xbf16>
      tpu.vector_store %arg20[%c0_65, %c0_66, %c0_67], %142 {strides = array<i32>} : memref<4x8x8xbf16, #tpu.memory_space<vmem>>, vector<1x8x8xbf16>,
      %143 = vector.extract_strided_slice %138 {offsets = [0, 32], sizes = [8, 8], strides = [1, 1]} : vector<8x64xbf16> to vector<8x8xbf16>
      %c0_68 = arith.constant 0 : index
      %c0_69 = arith.constant 0 : index
      %c0_70 = arith.constant 0 : index
      %144 = vector.load %arg21[%c0_68, %c0_69, %c0_70] : memref<4x8x8xbf16, #tpu.memory_space<vmem>>, vector<1x8x8xbf16>
      %145 = vector.shape_cast %144 : vector<1x8x8xbf16> to vector<8x8xbf16>
      %146 = vector.shape_cast %143 : vector<8x8xbf16> to vector<1x8x8xbf16>
      tpu.vector_store %arg21[%c0_68, %c0_69, %c0_70], %146 {strides = array<i32>} : memref<4x8x8xbf16, #tpu.memory_space<vmem>>, vector<1x8x8xbf16>,
      %147 = vector.extract_strided_slice %138 {offsets = [0, 8], sizes = [8, 8], strides = [1, 1]} : vector<8x64xbf16> to vector<8x8xbf16>
      %c1 = arith.constant 1 : index
      %c0_71 = arith.constant 0 : index
      %c0_72 = arith.constant 0 : index
      %148 = vector.load %arg20[%c1, %c0_71, %c0_72] : memref<4x8x8xbf16, #tpu.memory_space<vmem>>, vector<1x8x8xbf16>
      %149 = vector.shape_cast %148 : vector<1x8x8xbf16> to vector<8x8xbf16>
      %150 = vector.shape_cast %147 : vector<8x8xbf16> to vector<1x8x8xbf16>
      tpu.vector_store %arg20[%c1, %c0_71, %c0_72], %150 {strides = array<i32>} : memref<4x8x8xbf16, #tpu.memory_space<vmem>>, vector<1x8x8xbf16>,
      %151 = vector.extract_strided_slice %138 {offsets = [0, 40], sizes = [8, 8], strides = [1, 1]} : vector<8x64xbf16> to vector<8x8xbf16>
      %c1_73 = arith.constant 1 : index
      %c0_74 = arith.constant 0 : index
      %c0_75 = arith.constant 0 : index
      %152 = vector.load %arg21[%c1_73, %c0_74, %c0_75] : memref<4x8x8xbf16, #tpu.memory_space<vmem>>, vector<1x8x8xbf16>
      %153 = vector.shape_cast %152 : vector<1x8x8xbf16> to vector<8x8xbf16>
      %154 = vector.shape_cast %151 : vector<8x8xbf16> to vector<1x8x8xbf16>
      tpu.vector_store %arg21[%c1_73, %c0_74, %c0_75], %154 {strides = array<i32>} : memref<4x8x8xbf16, #tpu.memory_space<vmem>>, vector<1x8x8xbf16>,
      %155 = vector.extract_strided_slice %138 {offsets = [0, 16], sizes = [8, 8], strides = [1, 1]} : vector<8x64xbf16> to vector<8x8xbf16>
      %c2 = arith.constant 2 : index
      %c0_76 = arith.constant 0 : index
      %c0_77 = arith.constant 0 : index
      %156 = vector.load %arg20[%c2, %c0_76, %c0_77] : memref<4x8x8xbf16, #tpu.memory_space<vmem>>, vector<1x8x8xbf16>
      %157 = vector.shape_cast %156 : vector<1x8x8xbf16> to vector<8x8xbf16>
      %158 = vector.shape_cast %155 : vector<8x8xbf16> to vector<1x8x8xbf16>
      tpu.vector_store %arg20[%c2, %c0_76, %c0_77], %158 {strides = array<i32>} : memref<4x8x8xbf16, #tpu.memory_space<vmem>>, vector<1x8x8xbf16>,
      %159 = vector.extract_strided_slice %138 {offsets = [0, 48], sizes = [8, 8], strides = [1, 1]} : vector<8x64xbf16> to vector<8x8xbf16>
      %c2_78 = arith.constant 2 : index
      %c0_79 = arith.constant 0 : index
      %c0_80 = arith.constant 0 : index
      %160 = vector.load %arg21[%c2_78, %c0_79, %c0_80] : memref<4x8x8xbf16, #tpu.memory_space<vmem>>, vector<1x8x8xbf16>
      %161 = vector.shape_cast %160 : vector<1x8x8xbf16> to vector<8x8xbf16>
      %162 = vector.shape_cast %159 : vector<8x8xbf16> to vector<1x8x8xbf16>
      tpu.vector_store %arg21[%c2_78, %c0_79, %c0_80], %162 {strides = array<i32>} : memref<4x8x8xbf16, #tpu.memory_space<vmem>>, vector<1x8x8xbf16>,
      %163 = vector.extract_strided_slice %138 {offsets = [0, 24], sizes = [8, 8], strides = [1, 1]} : vector<8x64xbf16> to vector<8x8xbf16>
      %c3 = arith.constant 3 : index
      %c0_81 = arith.constant 0 : index
      %c0_82 = arith.constant 0 : index
      %164 = vector.load %arg20[%c3, %c0_81, %c0_82] : memref<4x8x8xbf16, #tpu.memory_space<vmem>>, vector<1x8x8xbf16>
      %165 = vector.shape_cast %164 : vector<1x8x8xbf16> to vector<8x8xbf16>
      %166 = vector.shape_cast %163 : vector<8x8xbf16> to vector<1x8x8xbf16>
      tpu.vector_store %arg20[%c3, %c0_81, %c0_82], %166 {strides = array<i32>} : memref<4x8x8xbf16, #tpu.memory_space<vmem>>, vector<1x8x8xbf16>,
      %167 = vector.extract_strided_slice %138 {offsets = [0, 56], sizes = [8, 8], strides = [1, 1]} : vector<8x64xbf16> to vector<8x8xbf16>
      %c3_83 = arith.constant 3 : index
      %c0_84 = arith.constant 0 : index
      %c0_85 = arith.constant 0 : index
      %168 = vector.load %arg21[%c3_83, %c0_84, %c0_85] : memref<4x8x8xbf16, #tpu.memory_space<vmem>>, vector<1x8x8xbf16>
      %169 = vector.shape_cast %168 : vector<1x8x8xbf16> to vector<8x8xbf16>
      %170 = vector.shape_cast %167 : vector<8x8xbf16> to vector<1x8x8xbf16>
      tpu.vector_store %arg21[%c3_83, %c0_84, %c0_85], %170 {strides = array<i32>} : memref<4x8x8xbf16, #tpu.memory_space<vmem>>, vector<1x8x8xbf16>,
    } else {
    }
    %5 = arith.truncf %1 : vector<8x32xf32> to vector<8x32xbf16>
    %c0_3 = arith.constant 0 : index
    %c0_4 = arith.constant 0 : index
    %6 = vector.load %arg5[%c0_3, %c0_4] : memref<32x32xbf16, #tpu.memory_space<vmem>>, vector<32x32xbf16>
    %cst = arith.constant dense<0.000000e+00> : vector<8x32xf32>
    %7 = tpu.matmul %5, %6, %cst {dimension_numbers = #tpu.dot_dimension_numbers<[1], [0], [0], [1], [0, 0, 1, 1], [], []>} : vector<8x32xbf16>, vector<32x32xbf16>, vector<8x32xf32> -> vector<8x32xf32>
    %c0_5 = arith.constant 0 : index
    %c0_6 = arith.constant 0 : index
    %8 = vector.load %arg6[%c0_5, %c0_6] : memref<1x32xf32, #tpu.memory_space<vmem>>, vector<1x32xf32>
    %9 = vector.broadcast %8 : vector<1x32xf32> to vector<8x32xf32>
    %10 = arith.addf %7, %9 : vector<8x32xf32>
    %11 = arith.truncf %10 : vector<8x32xf32> to vector<8x32xbf16>
    %12 = vector.extract_strided_slice %11 {offsets = [0, 0], sizes = [8, 8], strides = [1, 1]} : vector<8x32xbf16> to vector<8x8xbf16>
    %13 = vector.extract_strided_slice %11 {offsets = [0, 8], sizes = [8, 8], strides = [1, 1]} : vector<8x32xbf16> to vector<8x8xbf16>
    %14 = vector.extract_strided_slice %11 {offsets = [0, 16], sizes = [8, 8], strides = [1, 1]} : vector<8x32xbf16> to vector<8x8xbf16>
    %15 = vector.extract_strided_slice %11 {offsets = [0, 24], sizes = [8, 8], strides = [1, 1]} : vector<8x32xbf16> to vector<8x8xbf16>
    %16 = vector.shape_cast %12 : vector<8x8xbf16> to vector<1x8x8xbf16>
    %17 = vector.shape_cast %13 : vector<8x8xbf16> to vector<1x8x8xbf16>
    %18 = vector.shape_cast %14 : vector<8x8xbf16> to vector<1x8x8xbf16>
    %19 = vector.shape_cast %15 : vector<8x8xbf16> to vector<1x8x8xbf16>
    %20 = tpu.concatenate %16, %17, %18, %19 in 0 : vector<1x8x8xbf16>, vector<1x8x8xbf16>, vector<1x8x8xbf16>, vector<1x8x8xbf16> -> vector<4x8x8xbf16>
    %c0_7 = arith.constant 0 : index
    %c0_8 = arith.constant 0 : index
    %c0_9 = arith.constant 0 : index
    %21 = vector.load %arg4[%c0_7, %c0_8, %c0_9] : memref<1x8x8xbf16, #tpu.memory_space<vmem>>, vector<1x8x8xbf16>
    %22 = vector.shape_cast %21 : vector<1x8x8xbf16> to vector<8x8xbf16>
    %23 = arith.extf %22 : vector<8x8xbf16> to vector<8x8xf32>
    %c0_10 = arith.constant 0 : index
    %c0_11 = arith.constant 0 : index
    %c0_12 = arith.constant 0 : index
    %24 = vector.load %arg20[%c0_10, %c0_11, %c0_12] : memref<4x8x8xbf16, #tpu.memory_space<vmem>>, vector<4x8x8xbf16>
    "tpu.trace_start"() <{level = 10 : i32, message = "htc,hsc->hts"}> : () -> ()
    %cst_13 = arith.constant dense<0.000000e+00> : vector<4x8x8xf32>
    %25 = tpu.matmul %20, %24, %cst_13 {dimension_numbers = #tpu.dot_dimension_numbers<[2], [2], [1], [1], [0, 0, 0, 1, 1, 1], [0], [0]>} : vector<4x8x8xbf16>, vector<4x8x8xbf16>, vector<4x8x8xf32> -> vector<4x8x8xf32>
    "tpu.trace_stop"() : () -> ()
    %26 = vector.shape_cast %23 : vector<8x8xf32> to vector<1x8x8xf32>
    %27 = vector.broadcast %26 : vector<1x8x8xf32> to vector<4x8x8xf32>
    %28 = arith.addf %25, %27 : vector<4x8x8xf32>
    %cst_14 = arith.constant dense<0xFF800000> : vector<4x8xf32>
    %29 = vector.multi_reduction <maximumf>, %28, %cst_14 [2] : vector<4x8x8xf32> to vector<4x8xf32>
    %30 = vector.shape_cast %29 : vector<4x8xf32> to vector<4x8x1xf32>
    %31 = vector.broadcast %30 : vector<4x8x1xf32> to vector<4x8x8xf32>
    %32 = arith.subf %28, %31 : vector<4x8x8xf32>
    %33 = math.exp %32 : vector<4x8x8xf32>
    %cst_15 = arith.constant dense<0.000000e+00> : vector<4x8xf32>
    %34 = vector.multi_reduction <add>, %33, %cst_15 [2] : vector<4x8x8xf32> to vector<4x8xf32>
    %35 = vector.shape_cast %34 : vector<4x8xf32> to vector<4x8x1xf32>
    %36 = arith.truncf %33 : vector<4x8x8xf32> to vector<4x8x8xbf16>
    %c0_16 = arith.constant 0 : index
    %c0_17 = arith.constant 0 : index
    %c0_18 = arith.constant 0 : index
    %37 = vector.load %arg21[%c0_16, %c0_17, %c0_18] : memref<4x8x8xbf16, #tpu.memory_space<vmem>>, vector<4x8x8xbf16>
    "tpu.trace_start"() <{level = 10 : i32, message = "hts,hsc->htc"}> : () -> ()
    %cst_19 = arith.constant dense<0.000000e+00> : vector<4x8x8xf32>
    %38 = tpu.matmul %36, %37, %cst_19 {dimension_numbers = #tpu.dot_dimension_numbers<[2], [1], [1], [2], [0, 0, 0, 1, 1, 2], [0], [0]>} : vector<4x8x8xbf16>, vector<4x8x8xbf16>, vector<4x8x8xf32> -> vector<4x8x8xf32>
    "tpu.trace_stop"() : () -> ()
    %39 = tpu.reciprocal %35 : vector<4x8x1xf32> -> vector<4x8x1xf32>
    %40 = vector.broadcast %39 : vector<4x8x1xf32> to vector<4x8x8xf32>
    %41 = arith.mulf %38, %40 : vector<4x8x8xf32>
    %42 = vector.extract_strided_slice %41 {offsets = [0, 0, 0], sizes = [1, 8, 8], strides = [1, 1, 1]} : vector<4x8x8xf32> to vector<1x8x8xf32>
    %43 = vector.shape_cast %42 : vector<1x8x8xf32> to vector<8x8xf32>
    %44 = vector.extract_strided_slice %41 {offsets = [1, 0, 0], sizes = [1, 8, 8], strides = [1, 1, 1]} : vector<4x8x8xf32> to vector<1x8x8xf32>
    %45 = vector.shape_cast %44 : vector<1x8x8xf32> to vector<8x8xf32>
    %46 = vector.extract_strided_slice %41 {offsets = [2, 0, 0], sizes = [1, 8, 8], strides = [1, 1, 1]} : vector<4x8x8xf32> to vector<1x8x8xf32>
    %47 = vector.shape_cast %46 : vector<1x8x8xf32> to vector<8x8xf32>
    %48 = vector.extract_strided_slice %41 {offsets = [3, 0, 0], sizes = [1, 8, 8], strides = [1, 1, 1]} : vector<4x8x8xf32> to vector<1x8x8xf32>
    %49 = vector.shape_cast %48 : vector<1x8x8xf32> to vector<8x8xf32>
    %50 = tpu.concatenate %43, %45, %47, %49 in 1 : vector<8x8xf32>, vector<8x8xf32>, vector<8x8xf32>, vector<8x8xf32> -> vector<8x32xf32>
    %51 = arith.truncf %50 : vector<8x32xf32> to vector<8x32xbf16>
    %c0_20 = arith.constant 0 : index
    %c0_21 = arith.constant 0 : index
    %52 = vector.load %arg9[%c0_20, %c0_21] : memref<32x32xbf16, #tpu.memory_space<vmem>>, vector<32x32xbf16>
    %cst_22 = arith.constant dense<0.000000e+00> : vector<8x32xf32>
    %53 = tpu.matmul %51, %52, %cst_22 {dimension_numbers = #tpu.dot_dimension_numbers<[1], [0], [0], [1], [0, 0, 1, 1], [], []>} : vector<8x32xbf16>, vector<32x32xbf16>, vector<8x32xf32> -> vector<8x32xf32>
    %c0_23 = arith.constant 0 : index
    %c0_24 = arith.constant 0 : index
    %54 = vector.load %arg10[%c0_23, %c0_24] : memref<1x32xf32, #tpu.memory_space<vmem>>, vector<1x32xf32>
    %55 = vector.broadcast %54 : vector<1x32xf32> to vector<8x32xf32>
    %56 = arith.addf %53, %55 : vector<8x32xf32>
    %57 = arith.addf %1, %56 : vector<8x32xf32>
    %c0_25 = arith.constant 0 : index
    %c0_26 = arith.constant 0 : index
    %58 = vector.load %arg11[%c0_25, %c0_26] : memref<1x32xf32, #tpu.memory_space<vmem>>, vector<1x32xf32>
    %c0_27 = arith.constant 0 : index
    %c0_28 = arith.constant 0 : index
    %59 = vector.load %arg12[%c0_27, %c0_28] : memref<1x32xf32, #tpu.memory_space<vmem>>, vector<1x32xf32>
    %cst_29 = arith.constant dense<0.000000e+00> : vector<8xf32>
    %60 = vector.multi_reduction <add>, %57, %cst_29 [1] : vector<8x32xf32> to vector<8xf32>
    %61 = vector.shape_cast %60 : vector<8xf32> to vector<8x1xf32>
    %cst_30 = arith.constant 3.200000e+01 : f32
    %62 = vector.broadcast %cst_30 : f32 to vector<8x1xf32>
    %63 = arith.divf %61, %62 : vector<8x1xf32>
    %64 = vector.broadcast %63 : vector<8x1xf32> to vector<8x32xf32>
    %65 = arith.subf %57, %64 : vector<8x32xf32>
    %66 = arith.mulf %65, %65 : vector<8x32xf32>
    %cst_31 = arith.constant dense<0.000000e+00> : vector<8xf32>
    %67 = vector.multi_reduction <add>, %66, %cst_31 [1] : vector<8x32xf32> to vector<8xf32>
    %68 = vector.shape_cast %67 : vector<8xf32> to vector<8x1xf32>
    %cst_32 = arith.constant 3.200000e+01 : f32
    %69 = vector.broadcast %cst_32 : f32 to vector<8x1xf32>
    %70 = arith.divf %68, %69 : vector<8x1xf32>
    %71 = vector.broadcast %63 : vector<8x1xf32> to vector<8x32xf32>
    %72 = arith.subf %57, %71 : vector<8x32xf32>
    %cst_33 = arith.constant 9.99999974E-6 : f32
    %73 = vector.broadcast %cst_33 : f32 to vector<8x1xf32>
    %74 = arith.addf %70, %73 : vector<8x1xf32>
    %75 = math.rsqrt %74 : vector<8x1xf32>
    %76 = vector.broadcast %75 : vector<8x1xf32> to vector<8x32xf32>
    %77 = arith.mulf %72, %76 : vector<8x32xf32>
    %78 = vector.broadcast %58 : vector<1x32xf32> to vector<8x32xf32>
    %79 = arith.mulf %77, %78 : vector<8x32xf32>
    %80 = vector.broadcast %59 : vector<1x32xf32> to vector<8x32xf32>
    %81 = arith.addf %79, %80 : vector<8x32xf32>
    %82 = arith.truncf %81 : vector<8x32xf32> to vector<8x32xbf16>
    %c0_34 = arith.constant 0 : index
    %c0_35 = arith.constant 0 : index
    %83 = vector.load %arg13[%c0_34, %c0_35] : memref<32x128xbf16, #tpu.memory_space<vmem>>, vector<32x128xbf16>
    %cst_36 = arith.constant dense<0.000000e+00> : vector<8x128xf32>
    %84 = tpu.matmul %82, %83, %cst_36 {dimension_numbers = #tpu.dot_dimension_numbers<[1], [0], [0], [1], [0, 0, 1, 1], [], []>} : vector<8x32xbf16>, vector<32x128xbf16>, vector<8x128xf32> -> vector<8x128xf32>
    %c0_37 = arith.constant 0 : index
    %c0_38 = arith.constant 0 : index
    %85 = vector.load %arg14[%c0_37, %c0_38] : memref<1x128xf32, #tpu.memory_space<vmem>>, vector<1x128xf32>
    %86 = vector.broadcast %85 : vector<1x128xf32> to vector<8x128xf32>
    %87 = arith.addf %84, %86 : vector<8x128xf32>
    %88 = vector.extract_strided_slice %87 {offsets = [0, 0], sizes = [8, 64], strides = [1, 1]} : vector<8x128xf32> to vector<8x64xf32>
    %89 = vector.extract_strided_slice %87 {offsets = [0, 64], sizes = [8, 64], strides = [1, 1]} : vector<8x128xf32> to vector<8x64xf32>
    %90 = arith.negf %88 : vector<8x64xf32>
    %91 = math.exp %90 : vector<8x64xf32>
    %cst_39 = arith.constant 1.000000e+00 : f32
    %92 = vector.broadcast %cst_39 : f32 to vector<8x64xf32>
    %93 = arith.addf %92, %91 : vector<8x64xf32>
    %94 = arith.divf %92, %93 : vector<8x64xf32>
    %95 = arith.mulf %88, %94 : vector<8x64xf32>
    %96 = arith.mulf %95, %89 : vector<8x64xf32>
    %97 = arith.truncf %96 : vector<8x64xf32> to vector<8x64xbf16>
    %c0_40 = arith.constant 0 : index
    %c0_41 = arith.constant 0 : index
    %98 = vector.load %arg15[%c0_40, %c0_41] : memref<64x32xbf16, #tpu.memory_space<vmem>>, vector<64x32xbf16>
    %cst_42 = arith.constant dense<0.000000e+00> : vector<8x32xf32>
    %99 = tpu.matmul %97, %98, %cst_42 {dimension_numbers = #tpu.dot_dimension_numbers<[1], [0], [0], [1], [0, 0, 1, 1], [], []>} : vector<8x64xbf16>, vector<64x32xbf16>, vector<8x32xf32> -> vector<8x32xf32>
    %c0_43 = arith.constant 0 : index
    %c0_44 = arith.constant 0 : index
    %100 = vector.load %arg16[%c0_43, %c0_44] : memref<1x32xf32, #tpu.memory_space<vmem>>, vector<1x32xf32>
    %101 = vector.broadcast %100 : vector<1x32xf32> to vector<8x32xf32>
    %102 = arith.addf %99, %101 : vector<8x32xf32>
    %103 = arith.addf %81, %102 : vector<8x32xf32>
    %c0_45 = arith.constant 0 : index
    %c0_46 = arith.constant 0 : index
    %104 = vector.load %arg17[%c0_45, %c0_46] : memref<1x32xf32, #tpu.memory_space<vmem>>, vector<1x32xf32>
    %c0_47 = arith.constant 0 : index
    %c0_48 = arith.constant 0 : index
    %105 = vector.load %arg18[%c0_47, %c0_48] : memref<1x32xf32, #tpu.memory_space<vmem>>, vector<1x32xf32>
    %cst_49 = arith.constant dense<0.000000e+00> : vector<8xf32>
    %106 = vector.multi_reduction <add>, %103, %cst_49 [1] : vector<8x32xf32> to vector<8xf32>
    %107 = vector.shape_cast %106 : vector<8xf32> to vector<8x1xf32>
    %cst_50 = arith.constant 3.200000e+01 : f32
    %108 = vector.broadcast %cst_50 : f32 to vector<8x1xf32>
    %109 = arith.divf %107, %108 : vector<8x1xf32>
    %110 = vector.broadcast %109 : vector<8x1xf32> to vector<8x32xf32>
    %111 = arith.subf %103, %110 : vector<8x32xf32>
    %112 = arith.mulf %111, %111 : vector<8x32xf32>
    %cst_51 = arith.constant dense<0.000000e+00> : vector<8xf32>
    %113 = vector.multi_reduction <add>, %112, %cst_51 [1] : vector<8x32xf32> to vector<8xf32>
    %114 = vector.shape_cast %113 : vector<8xf32> to vector<8x1xf32>
    %cst_52 = arith.constant 3.200000e+01 : f32
    %115 = vector.broadcast %cst_52 : f32 to vector<8x1xf32>
    %116 = arith.divf %114, %115 : vector<8x1xf32>
    %117 = vector.broadcast %109 : vector<8x1xf32> to vector<8x32xf32>
    %118 = arith.subf %103, %117 : vector<8x32xf32>
    %cst_53 = arith.constant 9.99999974E-6 : f32
    %119 = vector.broadcast %cst_53 : f32 to vector<8x1xf32>
    %120 = arith.addf %116, %119 : vector<8x1xf32>
    %121 = math.rsqrt %120 : vector<8x1xf32>
    %122 = vector.broadcast %121 : vector<8x1xf32> to vector<8x32xf32>
    %123 = arith.mulf %118, %122 : vector<8x32xf32>
    %124 = vector.broadcast %104 : vector<1x32xf32> to vector<8x32xf32>
    %125 = arith.mulf %123, %124 : vector<8x32xf32>
    %126 = vector.broadcast %105 : vector<1x32xf32> to vector<8x32xf32>
    %127 = arith.addf %125, %126 : vector<8x32xf32>
    %c0_54 = arith.constant 0 : index
    %c0_55 = arith.constant 0 : index
    %c0_56 = arith.constant 0 : index
    %128 = vector.load %arg19[%c0_54, %c0_55, %c0_56] : memref<1x8x32xf32, #tpu.memory_space<vmem>>, vector<1x8x32xf32>
    %129 = vector.shape_cast %128 : vector<1x8x32xf32> to vector<8x32xf32>
    %130 = vector.shape_cast %127 : vector<8x32xf32> to vector<1x8x32xf32>
    tpu.vector_store %arg19[%c0_54, %c0_55, %c0_56], %130 {strides = array<i32>} : memref<1x8x32xf32, #tpu.memory_space<vmem>>, vector<1x8x32xf32>,
    return
  }
  func.func @transform_0(%arg0: i32, %arg1: i32) -> (i32, i32, i32) {
    %c0_i32 = arith.constant 0 : i32
    %c0_i32_0 = arith.constant 0 : i32
    return %arg0, %arg1, %c0_i32 : i32, i32, i32
  }
  func.func @transform_1(%arg0: i32, %arg1: i32) -> (i32, i32, i32) {
    %c0_i32 = arith.constant 0 : i32
    %c0_i32_0 = arith.constant 0 : i32
    %c0_i32_1 = arith.constant 0 : i32
    return %arg0, %c0_i32, %c0_i32_0 : i32, i32, i32
  }
  func.func @transform_2(%arg0: i32, %arg1: i32) -> (i32, i32, i32) {
    %c0_i32 = arith.constant 0 : i32
    %c0_i32_0 = arith.constant 0 : i32
    return %arg0, %arg1, %c0_i32 : i32, i32, i32
  }
  func.func @transform_3(%arg0: i32, %arg1: i32) -> (i32, i32) {
    %c0_i32 = arith.constant 0 : i32
    %c0_i32_0 = arith.constant 0 : i32
    %c0_i32_1 = arith.constant 0 : i32
    return %c0_i32, %c0_i32_0 : i32, i32
  }
  func.func @transform_4(%arg0: i32, %arg1: i32) -> (i32, i32) {
    %c0_i32 = arith.constant 0 : i32
    %c0_i32_0 = arith.constant 0 : i32
    %c0_i32_1 = arith.constant 0 : i32
    return %c0_i32, %c0_i32_0 : i32, i32
  }
  func.func @transform_5(%arg0: i32, %arg1: i32) -> (i32, i32) {
    %c0_i32 = arith.constant 0 : i32
    %c0_i32_0 = arith.constant 0 : i32
    %c0_i32_1 = arith.constant 0 : i32
    return %c0_i32, %c0_i32_0 : i32, i32
  }
  func.func @transform_6(%arg0: i32, %arg1: i32) -> (i32, i32) {
    %c0_i32 = arith.constant 0 : i32
    %c0_i32_0 = arith.constant 0 : i32
    %c0_i32_1 = arith.constant 0 : i32
    return %c0_i32, %c0_i32_0 : i32, i32
  }
  func.func @transform_7(%arg0: i32, %arg1: i32) -> (i32, i32) {
    %c0_i32 = arith.constant 0 : i32
    %c0_i32_0 = arith.constant 0 : i32
    %c0_i32_1 = arith.constant 0 : i32
    return %c0_i32, %c0_i32_0 : i32, i32
  }
  func.func @transform_8(%arg0: i32, %arg1: i32) -> (i32, i32) {
    %c0_i32 = arith.constant 0 : i32
    %c0_i32_0 = arith.constant 0 : i32
    %c0_i32_1 = arith.constant 0 : i32
    return %c0_i32, %c0_i32_0 : i32, i32
  }
  func.func @transform_9(%arg0: i32, %arg1: i32) -> (i32, i32) {
    %c0_i32 = arith.constant 0 : i32
    %c0_i32_0 = arith.constant 0 : i32
    %c0_i32_1 = arith.constant 0 : i32
    return %c0_i32, %c0_i32_0 : i32, i32
  }
  func.func @transform_10(%arg0: i32, %arg1: i32) -> (i32, i32) {
    %c0_i32 = arith.constant 0 : i32
    %c0_i32_0 = arith.constant 0 : i32
    %c0_i32_1 = arith.constant 0 : i32
    return %c0_i32, %c0_i32_0 : i32, i32
  }
  func.func @transform_11(%arg0: i32, %arg1: i32) -> (i32, i32) {
    %c0_i32 = arith.constant 0 : i32
    %c0_i32_0 = arith.constant 0 : i32
    %c0_i32_1 = arith.constant 0 : i32
    return %c0_i32, %c0_i32_0 : i32, i32
  }
  func.func @transform_12(%arg0: i32, %arg1: i32) -> (i32, i32) {
    %c0_i32 = arith.constant 0 : i32
    %c0_i32_0 = arith.constant 0 : i32
    %c0_i32_1 = arith.constant 0 : i32
    return %c0_i32, %c0_i32_0 : i32, i32
  }
  func.func @transform_13(%arg0: i32, %arg1: i32) -> (i32, i32) {
    %c0_i32 = arith.constant 0 : i32
    %c0_i32_0 = arith.constant 0 : i32
    %c0_i32_1 = arith.constant 0 : i32
    return %c0_i32, %c0_i32_0 : i32, i32
  }
  func.func @transform_14(%arg0: i32, %arg1: i32) -> (i32, i32) {
    %c0_i32 = arith.constant 0 : i32
    %c0_i32_0 = arith.constant 0 : i32
    %c0_i32_1 = arith.constant 0 : i32
    return %c0_i32, %c0_i32_0 : i32, i32
  }
  func.func @transform_15(%arg0: i32, %arg1: i32) -> (i32, i32) {
    %c0_i32 = arith.constant 0 : i32
    %c0_i32_0 = arith.constant 0 : i32
    %c0_i32_1 = arith.constant 0 : i32
    return %c0_i32, %c0_i32_0 : i32, i32
  }
  func.func @transform_16(%arg0: i32, %arg1: i32) -> (i32, i32) {
    %c0_i32 = arith.constant 0 : i32
    %c0_i32_0 = arith.constant 0 : i32
    %c0_i32_1 = arith.constant 0 : i32
    return %c0_i32, %c0_i32_0 : i32, i32
  }
  func.func @transform_17(%arg0: i32, %arg1: i32) -> (i32, i32, i32) {
    %c0_i32 = arith.constant 0 : i32
    %c0_i32_0 = arith.constant 0 : i32
    return %arg0, %arg1, %c0_i32 : i32, i32, i32
  }
}

</mosaic_0001>

<bundles_post_ra>
// kernel: tpu_custom_call.1
= control target key start
LH: loop header
LB: loop body
LE: loop exit
PB: predicated region body
PF: predicated region fallthrough
CT: control target
= control target key end

     0   :  { %s2309_s0 = inlined_call_operand.vmem [shape: f32[2,8,32], index: 0, kind: input, shape index: {}]   ;;  %s2310_s1 = inlined_call_operand.hbm [shape: bf16[2,8,32], index: 1, kind: input, shape index: {}]   ;;  %s2311_s2 = inlined_call_operand.hbm [shape: bf16[2,8,8], index: 2, kind: input, shape index: {}]   ;;  %s2312_s3 = inlined_call_operand.vmem [shape: bf16[32,32], index: 3, kind: input, shape index: {}]   ;;  %s2313_s4 = inlined_call_operand.vmem [shape: f32[1,32], index: 4, kind: input, shape index: {}]   ;;  %s2314_s5 = inlined_call_operand.vmem [shape: bf16[32,64], index: 5, kind: input, shape index: {}]   ;;  %s2315_s6 = inlined_call_operand.vmem [shape: f32[1,64], index: 6, kind: input, shape index: {}]   ;;  %s2316_s7 = inlined_call_operand.hbm [shape: bf16[32,32], index: 7, kind: input, shape index: {}]   ;;  %s2317_s8 = inlined_call_operand.vmem [shape: f32[1,32], index: 8, kind: input, shape index: {}]   ;;  %s2318_s9 = inlined_call_operand.vmem [shape: f32[1,32], index: 9, kind: input, shape index: {}]   ;;  %s2319_s10 = inlined_call_operand.vmem [shape: f32[1,32], index: 10, kind: input, shape index: {}]   ;;  %s2320_s11 = inlined_call_operand.hbm [shape: bf16[32,128], index: 11, kind: input, shape index: {}]   ;;  %s2321_s12 = inlined_call_operand.vmem [shape: f32[1,128], index: 12, kind: input, shape index: {}]   ;;  %s2322_s13 = inlined_call_operand.vmem [shape: bf16[64,32], index: 13, kind: input, shape index: {}]   ;;  %s2323_s14 = inlined_call_operand.vmem [shape: f32[1,32], index: 14, kind: input, shape index: {}]   ;;  %s2324_s15 = inlined_call_operand.vmem [shape: f32[1,32], index: 15, kind: input, shape index: {}]   ;;  %s2325_s16 = inlined_call_operand.vmem [shape: f32[1,32], index: 16, kind: input, shape index: {}]   ;;  %s2326_s17 = inlined_call_operand.hbm [shape: f32[2,8,32], index: 17, kind: output, shape index: {}]  }
   0x1   :  { %2336 = sst [smem:[#allocation25_spill]] %s2309_s0 }
   0x2   :  { %2337 = sst [smem:[#allocation26_spill]] %s2310_s1 }
   0x3   :  { %2338 = sst [smem:[#allocation27_spill]] %s2316_s7 }
   0x4   :  { %2339 = sst [smem:[#allocation28_spill]] %s2318_s9 }
   0x5   :  { %2340 = sst [smem:[#allocation29_spill]] %s2319_s10 }
   0x6   :  { %2341 = sst [smem:[#allocation30_spill]] %s2320_s11 }
   0x7   :  { %2342 = sst [smem:[#allocation31_spill]] %s2321_s12 }
   0x8   :  { %2343 = sst [smem:[#allocation32_spill]] %s2322_s13 }
   0x9   :  { %2344 = sst [smem:[#allocation33_spill]] %s2323_s14 }
   0xa   :  { %2345 = sst [smem:[#allocation34_spill]] %s2324_s15 }
   0xb   :  { %2346 = sst [smem:[#allocation35_spill]] %s2325_s16 }
   0xc   :  { %2347 = sst [smem:[#allocation36_spill]] %s2326_s17 }
   0xd   :  { %22 = vsyncpa [#allocation5], 0 }
   0xe   :  { %24 = vsyncpa [#allocation5 + $0x1], 0 }
   0xf   :  { %25 = vsyncpa [#allocation8], 0 }
  0x10   :  { %27 = vsyncpa [#allocation8 + $0x1], 0 }
  0x11   :  { %28 = vsyncpa [#allocation11], 0 }
  0x12   :  { %29 = vsyncpa [#allocation6], 0 }
  0x13   :  { %31 = vsyncpa [#allocation6 + $0x1], 0  ;;  %s2027_s24 = smov 0   ;;  %s2029_s25 = smov 0  }
  0x14   :  { %s2031_s26 = smov 0   ;;  %s2033_s27 = smov 0  }
  0x15   :  { %s2035_s28 = smov 0   ;;  %s2037_s29 = smov 0  }
  0x16 LB: > { %2348 = sst [smem:[#allocation18_spill]] %s1899_s24  ;;  %s2058_s0 = sadd.s32 4294967295, %s1919_s29   ;;  %s1919_s29 = sphi %s2037_s29, %s37_s29   ;;  %s1915_s28 = sphi %s2035_s28, %s2379_s28   ;;  %s1911_s27 = sphi %s2033_s27, %s2378_s27   ;;  %s1907_s26 = sphi %s2031_s26, %s2382_s26   ;;  %s1903_s25 = sphi %s2029_s25, %s2381_s25   ;;  %s1899_s24 = sphi %s2027_s24, %s2380_s24  }
  0x17   : > { %2349 = sst [smem:[#allocation19_spill]] %s1907_s26  ;;  %p1475_p0 = scmp.ge.s32.totalorder %s1919_s29, 1 }
  0x18   : > { %2350 = sst [smem:[#allocation20_spill]] %s1915_s28  ;;  %p98_p1 = scmp.eq.s32.totalorder %s2058_s0, 0 }
  0x19   : > { %p458_p2 = scmp.lt.s32.totalorder %s1919_s29, 3  ;;  %s2351_s7 = sld [smem:[#allocation27_spill]] }
  0x1a   : > { %s1921_s20 = smov [#allocation9]   ;;  %p1478_p6 = scmp.ge.s32.totalorder %s1919_s29, 2 }
  0x1b   : > { %p2066_p3 = pnand %p1475_p0, %p458_p2  ;;  %s483_s21 = sshll.u32 %s1921_s20, 4  ;;  %s484_s21 = int_to_ptr.vmem [resolvable:$true] %s483_s21 }
  0x1c   : > { %s2353_s11 = sld [smem:[#allocation30_spill]]  ;;  %s1922_s18 = smov 64  }
  0x1d   : > { %p1582_p4 = pneg %p2066_p3  ;;  %s1924_s20 = smov [#allocation10]  }
  0x1e   : > { %s506_s16 = sshll.u32 %s1924_s20, 4  ;;  %s1474_s17 = sadd.s32 4294967294, %s1919_s29   ;;  %s507_s16 = int_to_ptr.vmem [resolvable:$true] %s506_s16 }
  0x1f   : > { %s481_s19 = sshll.u32 %s2351_s7, 4  ;;  %p1583_p5 = pnand %p1582_p4, %p98_p1  ;;  %s482_s19 = int_to_ptr.hbm [resolvable:$true] %s481_s19 }
  0x20   : > { %s1923_s7 = smov 4   ;;  %s49_s15 = sadd.s32 1, %s1915_s28 }
  0x21   : > { %1585 = dma.hbm_to_vmem [thread:$0]  (!%p1583_p5), %s482_s19, 256, %s484_s21, [#allocation8], %s1922_s18, %s1922_s18, %s1923_s7  }
  0x22   : > { %s504_s30 = sshll.u32 %s2353_s11, 4  ;;  %p51_p7 = scmp.ge.s32.totalorder %s49_s15, 2  ;;  %s505_s30 = int_to_ptr.hbm [resolvable:$true] %s504_s30 }
  0x23   : > { %1588 = dma.hbm_to_vmem [thread:$0]  (!%p1583_p5), %s505_s30, 256, %s507_s16, [#allocation11], %s1922_s18, %s1922_s18, %s1923_s7  }
  0x24   : > { %s84_s22 = sadd.s32 1, %s1907_s26  ;;  %p91_p8 = scmp.ne.s32.totalorder %s1907_s26, %s1903_s25 }
  0x25   : > { %p92_p9 = scmp.eq.s32.totalorder %s1919_s29, 0  ;;  %s2384_s15 = smov (%p51_p7, %s49_s15), 0 }
  0x26   : > { %2354 = sst [smem:[#allocation21_spill]] %s2384_s15  ;;  %p97_p11 = scmp.ne.s32.totalorder %s1903_s25, %s1899_s24 }
  0x27   : > { %p2086_p10 = por %p92_p9, %p91_p8  ;;  %s81_s21 = ssub.s32 %s1915_s28, %s2384_s15 }
  0x28   : > { %p445_p12 = scmp.eq.s32.totalorder %s2058_s0, 1  ;;  %p82_p13 = scmp.eq.s32.totalorder %s81_s21, 0 }
  0x29   : > { %p2097_p0 = por %p98_p1, %p97_p11  ;;  %p451_p4 = scmp.eq.s32.totalorder %s1474_s17, 1 }
  0x2a   : > { %p2101_p2 = por %p445_p12, %p91_p8  ;;  %p1602_p7 = scmp.lt.s32.totalorder %s1919_s29, 2 }
  0x2b   : > { %s2106_s23 = scalar_select %p82_p13, %s1907_s26, %s84_s22  }
  0x2c   : > { %s2357_s16 = scalar_select %p2101_p2, 1, 0 }
  0x2d   : > { %2359 = sst [smem:[#allocation23_spill]] %s2106_s23  ;;  %p2108_p5 = por %p451_p4, %p97_p11 }
  0x2e   : > { %2358 = sst [smem:[#allocation22_spill]] %s2357_s16  ;;  %s545_s18 = sand.u32 1, %s1907_s26  }
  0x2f   : > { %s2360_s30 = scalar_select %p2108_p5, 1, 0 }
  0x30   : > { %s1480_s20 = sshll.u32 %s1915_s28, 2  ;;  %s1479_s21 = sshll.u32 %s545_s18, 2 }
  0x31   : > { %2361 = sst [smem:[#allocation24_spill]] %s2360_s30  ;;  %s549_s13 = scalar_lea.vmem [#allocation4], %s1479_s21 }
  0x32   : > { %s2362_s24 = sld [smem:[#allocation26_spill]]  ;;  %s557_s10 = sshll.u32 %s549_s13, 4  ;;  %s558_s10 = int_to_ptr.vmem [resolvable:$true] %s557_s10 }
  0x33   : > { %p1590_p8 = pnand %p1602_p7, %p2086_p10  ;;  %s573_s23 = scalar_lea.hbm %s2311_s2, %s1480_s20 }
  0x34   : > { %s564_s30 = sand.u32 1, %s1919_s29   ;;  %s546_s16 = scalar_lea.sflag [#allocation5], %s545_s18 }
  0x35   : > { %s575_s28 = sshll.u32 %s573_s23, 4  ;;  %s568_s26 = scalar_lea.vmem [#allocation7], %s1479_s21  ;;  %s576_s28 = int_to_ptr.hbm [resolvable:$true] %s575_s28 }
  0x36   : > { %s577_s9 = sshll.u32 %s568_s26, 4  ;;  %s565_s11 = scalar_lea.sflag [#allocation8], %s564_s30  ;;  %s578_s9 = int_to_ptr.vmem [resolvable:$true] %s577_s9 }
  0x37   : > { %1595 = dma.hbm_to_vmem [thread:$0]  (!%p1590_p8), %s576_s28, 64, %s578_s9, %s565_s11  }
  0x38   : > { %s553_s14 = scalar_lea.hbm %s2362_s24, %s1480_s20  ;;  %586 = sbr.rel (%p2066_p3) target bundleno = 1927 (0x787), region = 88 }
  0x39   : > { %s555_s12 = sshll.u32 %s553_s14, 4  ;;  %s2127_s13 = sand.u32 (!%p2066_p3), 1, %s1903_s25   ;;  %s556_s12 = int_to_ptr.hbm [resolvable:$true] %s555_s12 }
  0x3a   : > { %1592 = dma.hbm_to_vmem [thread:$0]  (!%p1590_p8), %s556_s12, 64, %s558_s10, %s546_s16  }
  0x3b   : > { %s1484_s14 = sshll.u32 (!%p2066_p3), %s2127_s13, 2  ;;  %s589_s15 = scalar_lea.sflag (!%p2066_p3), [#allocation5], %s2127_s13 }
  0x3c   : > { %s592_s24 = scalar_lea.vmem (!%p2066_p3), [#allocation4], %s1484_s14 }
  0x3d   : > { %1878 = dma.done.wait (%p2097_p0), %s589_s15, 64  }
  0x3e   : > { %1880 = vsyncadd (%p2097_p0), %s589_s15, 4294967232  ;;  %s598_s9 = sand.u32 1, %s2058_s0   ;;  %s2136_s12 = scalar_lea.vmem [#allocation7], %s1484_s14 }
  0x3f   : > { %s599_s10 = scalar_lea.sflag [#allocation8], %s598_s9 }
  0x40   : > { %1882 = dma.done.wait (%p2097_p0), %s599_s10, 64  }
  0x41   : > { %1884 = vsyncadd (%p2097_p0), %s599_s10, 4294967232 }
  0x42   : > { %1886 = dma.done.wait (%p98_p1), [#allocation8], 256  }
  0x43   : > { %1888 = vsyncadd (%p98_p1), [#allocation8], 4294967040 }
  0x44   : > { %1890 = dma.done.wait (%p98_p1), [#allocation11], 256  }
  0x45   : > { %1892 = vsyncadd (%p98_p1), [#allocation11], 4294967040  ;;  %p676_p3 = scmp.lt.s32.totalorder %s1911_s27, 1  ;;  %s2363_s7 = sld [smem:[#allocation25_spill]]  ;;  %v1557_v0 = vld [vmem:[%s2314_s5 + $0x8] sm:$0xff]  ;;  %v1556_v1 = vld [vmem:[%s2314_s5] sm:$0xff] }
  0x46   : > { %v1559_v2 = vld [vmem:[%s2312_s3 + $0x8] sm:$0xff]  ;;  %v1558_v3 = vld [vmem:[%s2312_s3] sm:$0xff]  ;;  %720 = vmatpush.bf16.msra.mxu0 %v1557_v0  ;;  %vm710_vm0 = vcmask 261120   ;;  %vm728_vm1 = vcmask 60416   ;;  %s1926_s10 = smov 120   ;;  %vm817_vm2 = vcmask 64512  }
  0x47   : > { %s677_s26 = scalar_select %p676_p3, %s1911_s27, 1  ;;  %796 = vmatpush.bf16.msra.mxu1 %v1559_v2  ;;  %v689_v5 = vld [vmem:[%s592_s24] sm:$0xf]  ;;  %vm941_vm3 = vcmask 1043456   ;;  %v811_v36 = vld [vmem:[%s2136_s12] sm:$0xf] }
  0x48   : > { %v1670_v7 = vld [vmem:[%s2315_s6] ss:$0 sm:$0xff]  ;;  %s1925_s24 = smov 104   ;;  %v812_v37 = vunpack.c.l.bf16 %v811_v36  ;;  %s1929_s12 = smov 72  }
  0x49   : > { %s1489_s28 = sshll.u32 %s677_s26, 3  ;;  %v1671_v8 = vld [vmem:[%s2313_s4] ss:$0 sm:$0xff]  ;;  %s1927_s26 = smov 112  }
  0x4a   : > { %721 = vmatpush.bf16.msra.mxu0 %v1556_v1  ;;  %s1930_s1 = smov 80   ;;  %s1931_s19 = smov 96  }
  0x4b   : > { %s682_s16 = scalar_lea.vmem %s2363_s7, %s1489_s28  ;;  %797 = vmatpush.bf16.msra.mxu1 %v1558_v3  ;;  %s1928_s28 = smov 88  }
  0x4c   : > { %v2167_v4 = vld [vmem:[%s682_s16] sm:$0xff]  ;;  %s1932_s7 = smov 8   ;;  %s1933_s16 = smov 16  }
  0x4d   : > { %v765_v6 = vpack.c.bf16 %v2167_v4, %v2167_v4  ;;  %1498 = vmatmul.msk.bf16.vlgmr.msra.gmra.mxu0 %vm710_vm0, %v689_v5  ;;  %s1934_s23 = smov 24   ;;  %s2364_s0 = sld [smem:[#allocation28_spill]] }
  0x4e   : > { %s2365_s11 = sld [smem:[#allocation29_spill]]  ;;  %s1488_s21 = sshll.u32 %s2127_s13, 3 }
  0x4f   : > { %1507 = vmatmul.msk.bf16.vlgmr.msra.gmra.mxu1 %vm710_vm0, %v765_v6  ;;  %s2366_s9 = sld [smem:[#allocation32_spill]] }
  0x50   : > { %s2368_s20 = sld [smem:[#allocation33_spill]] }
  0xca   : > { %v723_v9 = vpop.f32.mrf.mxu0 }
  0xcb   : > { %v724_v10 = vadd.f32 %v1670_v7, %v723_v9 }
  0xcc   : > { %v799_v11 = vpop.f32.mrf.mxu1 }
  0xcd   : > { %v800_v12 = vadd.f32 %v1671_v8, %v799_v11  ;;  %v2179_v13 = vpack.c.bf16 %v724_v10, %v724_v10 }
  0xcf   : > { %v803_v14 = vpack.c.bf16 %v800_v12, %v800_v12  ;;  %755 = vrot.lane.b32.xlu1 %v2179_v13, %s1925_s24  ;;  %735 = vrot.lane.b32.xlu0 %v2179_v13, %s1926_s10  ;;  %729 = vst.msk [vmem:[#allocation2] sm:$0xf] %vm728_vm1, %v2179_v13 }
  0xd1   : > { %807 = vrot.lane.b32.xlu2 %v803_v14, %s1927_s26 }
  0xd2   : > { %v725_v15 = vpop.f32.mrf.mxu0 }
  0xd4   : > { %v801_v16 = vpop.f32.mrf.mxu1 }
  0xd6   : > { %v813_v17 = vld [vmem:[#allocation2] sm:$0xf] }
  0xd7   : > { %745 = vrot.lane.b32.xlu0 %v2179_v13, %s1927_s26  ;;  %805 = vrot.lane.b32.xlu1 %v803_v14, %s1926_s10  ;;  %v822_v18 = vsel %vm817_vm2, %v813_v17, 0 }
  0xd8   : > { %831 = vmatpush.bf16.xpose.msra.mxu2 %v822_v18 }
  0xd9   : > { %809 = vrot.lane.b32.xlu2 %v803_v14, %s1925_s24  ;;  %s2370_s24 = sld [smem:[#allocation36_spill]] }
  0xdf   : > { %740 = vrot.lane.b32.xlu1 %v2179_v13, %s1928_s28  ;;  %1508 = vmatmul.msk.bf16.vlgmr.msra.gmra.mxu2 %vm817_vm2, %v803_v14  ;;  %s2371_s10 = smov %s2370_s24 }
 0x12b   : > { %v808_v21 = vpop.permute.xlu2 %807 }
 0x133   : > { %v810_v28 = vpop.permute.xlu2 %809 }
 0x141   : > { %v756_v19 = vpop.permute.xlu1 %755  ;;  %v736_v20 = vpop.permute.xlu0 %735 }
 0x142   : > { %759 = vst.msk [vmem:[#allocation2 + $0xc] sm:$0xf] %vm728_vm1, %v756_v19 }
 0x143   : > { %739 = vst.msk [vmem:[#allocation2 + $0x4] sm:$0xf] %vm728_vm1, %v736_v20 }
 0x149   : > { %v746_v22 = vpop.permute.xlu0 %745  ;;  %v806_v23 = vpop.permute.xlu1 %805  ;;  %v816_v24 = vld [vmem:[#allocation2 + $0xc] sm:$0xf] }
 0x14a   : > { %749 = vst.msk [vmem:[#allocation2 + $0x8] sm:$0xf] %vm728_vm1, %v746_v22  ;;  %v814_v25 = vld [vmem:[#allocation2 + $0x4] sm:$0xf]  ;;  %v879_v26 = vsel %vm817_vm2, %v816_v24, 0 }
 0x14b   : > { %v841_v27 = vsel %vm817_vm2, %v814_v25, 0  ;;  %888 = vmatpush.bf16.xpose.msrb.mxu1 %v879_v26 }
 0x14c   : > { %850 = vmatpush.bf16.xpose.msra.mxu3 %v841_v27 }
 0x151   : > { %v741_v29 = vpop.permute.xlu1 %740  ;;  %v815_v30 = vld [vmem:[#allocation2 + $0x8] sm:$0xf] }
 0x152   : > { %744 = vst.msk [vmem:[#allocation3 + $0x4] sm:$0xf] %vm728_vm1, %v741_v29  ;;  %1511 = vmatmul.msk.bf16.vlgmr.msrb.gmra.mxu1 %vm817_vm2, %v810_v28  ;;  %v860_v31 = vsel %vm817_vm2, %v815_v30, 0 }
 0x153   : > { %1509 = vmatmul.msk.bf16.vlgmr.msra.gmra.mxu3 %vm817_vm2, %v806_v23  ;;  %869 = vmatpush.bf16.xpose.msrb.mxu0 %v860_v31 }
 0x159   : > { %v935_v32 = vld [vmem:[#allocation3 + $0x4] sm:$0xf] }
 0x15a   : > { %1510 = vmatmul.msk.bf16.vlgmr.msrb.gmra.mxu0 %vm817_vm2, %v808_v21  ;;  %v962_v33 = vsel %vm941_vm3, %v935_v32, 0 }
 0x15b   : > { %971 = vmatpush.bf16.msrb.mxu3 %v962_v33 }
 0x162   : > { %v833_v34 = vpop.f32.mrf.mxu2 }
 0x163   : > { %v834_v41 = vadd.f32 %v833_v34, %v812_v37 }
 0x165   : > { %v894_v49 = vsel %vm817_vm2, %v834_v41, -inf }
 0x16a   : > { %v835_v35 = vpop.f32.mrf.mxu2 }
 0x1cf   : > { %v890_v38 = vpop.f32.mrf.mxu1 }
 0x1d0   : > { %v891_v39 = vadd.f32 %v890_v38, %v812_v37 }
 0x1d2   : > { %v903_v40 = vsel %vm817_vm2, %v891_v39, -inf }
 0x1d3   : > { %904 = vmax.xlane.f32.xlu1 %v903_v40 }
 0x1d6   : > { %v852_v42 = vpop.f32.mrf.mxu3 }
 0x1d7   : > { %v853_v43 = vadd.f32 %v852_v42, %v812_v37  ;;  %v871_v44 = vpop.f32.mrf.mxu0  ;;  %v892_v45 = vpop.f32.mrf.mxu1 }
 0x1d8   : > { %v872_v46 = vadd.f32 %v871_v44, %v812_v37 }
 0x1d9   : > { %v897_v47 = vsel %vm817_vm2, %v853_v43, -inf }
 0x1da   : > { %898 = vmax.xlane.f32.xlu0 %v897_v47  ;;  %v900_v48 = vsel %vm817_vm2, %v872_v46, -inf }
 0x1db   : > { %901 = vmax.xlane.f32.xlu2 %v900_v48  ;;  %895 = vmax.xlane.f32.xlu1 %v894_v49 }
 0x1de   : > { %v854_v50 = vpop.f32.mrf.mxu3 }
 0x1df   : > { %v873_v51 = vpop.f32.mrf.mxu0 }
 0x1ee   : > { %760 = vrot.lane.b32.xlu0 %v2179_v13, %s1929_s12 }
 0x1f3   : > { %750 = vrot.lane.b32.xlu2 %v2179_v13, %s1930_s1 }
 0x1f4   : > { %731 = vrot.lane.b32.xlu1 %v2179_v13, %s1931_s19  ;;  %s2367_s19 = sld [smem:[#allocation31_spill]] }
 0x246   : > { %v905_v52 = vpop.xlane.xlu1 %904 }
 0x247   : > { %v909_v53 = vsub.f32 %v891_v39, %v905_v52 }
 0x249   : > { %v916_v54 = vmul.f32 1.442695, %v909_v53 }
 0x24b   : > { %1679 = vpow2.f32 %v916_v54 }
 0x24d   : > { %v899_v55 = vpop.xlane.xlu0 %898 }
 0x24e   : > { %v907_v56 = vsub.f32 %v853_v43, %v899_v55  ;;  %v902_v57 = vpop.xlane.xlu2 %901  ;;  %v896_v58 = vpop.xlane.xlu1 %895 }
 0x24f   : > { %v908_v59 = vsub.f32 %v872_v46, %v902_v57  ;;  %v906_v61 = vsub.f32 %v834_v41, %v896_v58 }
 0x250   : > { %v912_v60 = vmul.f32 1.442695, %v907_v56 }
 0x251   : > { %v1680_v62 = vpop.eup %1679  ;;  %v914_v63 = vmul.f32 1.442695, %v908_v59  ;;  %v910_v1 = vmul.f32 1.442695, %v906_v61 }
 0x252   : > { %1681 = vpow2.f32 %v912_v60  ;;  %v927_v0 = vsel %vm817_vm2, %v1680_v62, 0.0  ;;  %v933_v18 = vpack.c.bf16 %v1680_v62, %v1680_v62 }
 0x253   : > { %1683 = vpow2.f32 %v914_v63  ;;  %928 = vadd.xlane.f32.xlu1 %v927_v0 }
 0x254   : > { %1685 = vpow2.f32 %v910_v1 }
 0x256   : > { %v751_v2 = vpop.permute.xlu2 %750 }
 0x257   : > { %754 = vst.msk [vmem:[#allocation3 + $0x8] sm:$0xf] %vm728_vm1, %v751_v2  ;;  %v1561_v2 = vld [vmem:[#allocation9 + $0x8] sm:$0xff] }
 0x258   : > { %v1682_v3 = vpop.eup %1681 }
 0x259   : > { %v1684_v5 = vpop.eup %1683  ;;  %v921_v6 = vsel %vm817_vm2, %v1682_v3, 0.0  ;;  %v931_v7 = vpack.c.bf16 %v1682_v3, %v1682_v3 }
 0x25a   : > { %922 = vadd.xlane.f32.xlu0 %v921_v6  ;;  %v924_v8 = vsel %vm817_vm2, %v1684_v5, 0.0  ;;  %v1686_v9 = vpop.eup %1685  ;;  %v932_v13 = vpack.c.bf16 %v1684_v5, %v1684_v5  ;;  %v1560_v5 = vld [vmem:[#allocation9] sm:$0xff] }
 0x25b   : > { %1513 = vmatmul.msk.bf16.vlgmr.msrb.gmra.mxu3 %vm817_vm2, %v931_v7  ;;  %925 = vadd.xlane.f32.xlu2 %v924_v8  ;;  %v918_v14 = vsel %vm817_vm2, %v1686_v9, 0.0  ;;  %v930_v21 = vpack.c.bf16 %v1686_v9, %v1686_v9 }
 0x25e   : > { %v936_v10 = vld [vmem:[#allocation3 + $0x8] sm:$0xf] }
 0x25f   : > { %v981_v11 = vsel %vm941_vm3, %v936_v10, 0 }
 0x260   : > { %v761_v12 = vpop.permute.xlu0 %760  ;;  %990 = vmatpush.bf16.msra.mxu0 %v981_v11 }
 0x261   : > { %764 = vst.msk [vmem:[#allocation3 + $0xc] sm:$0xf] %vm728_vm1, %v761_v12 }
 0x262   : > { %919 = vadd.xlane.f32.xlu0 %v918_v14 }
 0x263   : > { %1514 = vmatmul.msk.bf16.vlgmr.msra.gmra.mxu0 %vm817_vm2, %v932_v13 }
 0x266   : > { %v732_v15 = vpop.permute.xlu1 %731 }
 0x267   : > { %734 = vst.msk [vmem:[#allocation3] sm:$0xf] %vm728_vm1, %v732_v15 }
 0x268   : > { %v937_v16 = vld [vmem:[#allocation3 + $0xc] sm:$0xf] }
 0x269   : > { %v1000_v17 = vsel %vm941_vm3, %v937_v16, 0 }
 0x26a   : > { %1009 = vmatpush.bf16.msra.mxu1 %v1000_v17 }
 0x26d   : > { %1515 = vmatmul.msk.bf16.vlgmr.msra.gmra.mxu1 %vm817_vm2, %v933_v18 }
 0x26e   : > { %v934_v19 = vld [vmem:[#allocation3] sm:$0xf] }
 0x26f   : > { %v943_v20 = vsel %vm941_vm3, %v934_v19, 0 }
 0x270   : > { %952 = vmatpush.bf16.msrb.mxu2 %v943_v20 }
 0x273   : > { %1512 = vmatmul.msk.bf16.vlgmr.msrb.gmra.mxu2 %vm817_vm2, %v930_v21 }
 0x274   : > { %1122 = vmatpush.bf16.msra.mxu2 %v1561_v2 }
 0x278   : > { %1123 = vmatpush.bf16.msra.mxu2 %v1560_v5 }
 0x2c6   : > { %v929_v22 = vpop.xlane.xlu1 %928 }
 0x2c7   : > { %1687 = vrcp.f32 %v929_v22  ;;  %v1068_v54 = vand.u32 2147483648, %v929_v22  ;;  %vm1062_vm13 = vweird.f32 %v929_v22  ;;  %v1066_v55 = vand.u32 2147483647, %v929_v22 }
 0x2c9   : > { %v1069_v59 = vor.u32 1.1754944e-38, %v1068_v54  ;;  %vm1067_vm15 = vcmp.eq.f32.partialorder %v1066_v55, 8.507059e+37  ;;  %v1674_v54 = vld [vmem:[%s2365_s11] ss:$0 sm:$0xff]  ;;  %s2369_s11 = sld [smem:[#allocation34_spill]] }
 0x2cd   : > { %v923_v23 = vpop.xlane.xlu0 %922  ;;  %v1688_v25 = vpop.eup %1687 }
 0x2ce   : > { %1689 = vrcp.f32 %v923_v23  ;;  %v926_v24 = vpop.xlane.xlu2 %925  ;;  %v1058_v30 = vmul.f32 %v1688_v25, %v929_v22  ;;  %v1040_v33 = vand.u32 2147483648, %v923_v23  ;;  %v1038_v35 = vand.u32 2147483647, %v923_v23 }
 0x2cf   : > { %1691 = vrcp.f32 %v926_v24  ;;  %v1054_v36 = vand.u32 2147483648, %v926_v24  ;;  %v1052_v38 = vand.u32 2147483647, %v926_v24  ;;  %vm1034_vm6 = vweird.f32 %v923_v23 }
 0x2d0   : > { %v1059_v39 = vsub.f32 1.0, %v1058_v30  ;;  %v1041_v41 = vor.u32 1.1754944e-38, %v1040_v33  ;;  %vm1048_vm8 = vweird.f32 %v926_v24  ;;  %vm1039_vm9 = vcmp.eq.f32.partialorder %v1038_v35, 8.507059e+37 }
 0x2d1   : > { %v1055_v44 = vor.u32 1.1754944e-38, %v1054_v36  ;;  %vm1053_vm11 = vcmp.eq.f32.partialorder %v1052_v38, 8.507059e+37  ;;  %vm1063_vm12 = vweird.f32 %v1688_v25  ;;  %v1935_v30 = vmov 32.0  }
 0x2d2   : > { %v1060_v50 = vmul.f32 %v1688_v25, %v1059_v39  ;;  %vm1064_vm14 = vmor %vm1062_vm13, %vm1063_vm12 }
 0x2d4   : > { %v1690_v26 = vpop.eup %1689  ;;  %v1061_v53 = vadd.f32 %v1688_v25, %v1060_v50 }
 0x2d5   : > { %v1692_v27 = vpop.eup %1691  ;;  %v1030_v28 = vmul.f32 %v1690_v26, %v923_v23  ;;  %vm1035_vm4 = vweird.f32 %v1690_v26  ;;  %v920_v3 = vpop.xlane.xlu0 %919 }
 0x2d6   : > { %v1044_v29 = vmul.f32 %v1692_v27, %v926_v24  ;;  %vm1049_vm5 = vweird.f32 %v1692_v27  ;;  %vm1036_vm7 = vmor %vm1034_vm6, %vm1035_vm4  ;;  %v1065_v57 = vsel %vm1064_vm14, %v1688_v25, %v1061_v53  ;;  %1693 = vrcp.f32 %v920_v3  ;;  %v1672_v24 = vld [vmem:[%s2317_s8] ss:$0 sm:$0xff] }
 0x2d7   : > { %v1031_v31 = vsub.f32 1.0, %v1030_v28  ;;  %vm1050_vm10 = vmor %vm1048_vm8, %vm1049_vm5  ;;  %v1070_v61 = vsel %vm1067_vm15, %v1069_v59, %v1065_v57  ;;  %v1026_v11 = vand.u32 2147483648, %v920_v3  ;;  %vm1020_vm3 = vweird.f32 %v920_v3  ;;  %v1567_v59 = vld [vmem:[%s2366_s9 + $0x18] sm:$0xff] }
 0x2d8   : > { %v1045_v32 = vsub.f32 1.0, %v1044_v29  ;;  %v1024_v12 = vand.u32 2147483647, %v920_v3  ;;  %vm1088_vm6 = vcmask 130048   ;;  %1695 = vrcp.f32 %v1935_v30  ;;  %1276 = vmatpush.bf16.msrb.mxu0 %v1567_v59 }
 0x2d9   : > { %v1032_v34 = vmul.f32 %v1690_v26, %v1031_v31  ;;  %v1027_v14 = vor.u32 1.1754944e-38, %v1026_v11  ;;  %vm1268_vm15 = vcmask 523264  }
 0x2da   : > { %v1046_v37 = vmul.f32 %v1692_v27, %v1045_v32  ;;  %vm1025_vm5 = vcmp.eq.f32.partialorder %v1024_v12, 8.507059e+37 }
 0x2db   : > { %v1033_v40 = vadd.f32 %v1690_v26, %v1032_v34 }
 0x2dc   : > { %v1047_v42 = vadd.f32 %v1692_v27, %v1046_v37  ;;  %v1694_v6 = vpop.eup %1693 }
 0x2dd   : > { %v1037_v43 = vsel %vm1036_vm7, %v1690_v26, %v1033_v40  ;;  %v1016_v7 = vmul.f32 %v1694_v6, %v920_v3  ;;  %vm1021_vm1 = vweird.f32 %v1694_v6  ;;  %vm1090_vm7 = vcmask 195584  }
 0x2de   : > { %v973_v45 = vpop.f32.mrf.mxu3  ;;  %v1042_v46 = vsel %vm1039_vm9, %v1041_v41, %v1037_v43  ;;  %v1051_v47 = vsel %vm1050_vm10, %v1692_v27, %v1047_v42  ;;  %vm1022_vm4 = vmor %vm1020_vm3, %vm1021_vm1  ;;  %v1696_v31 = vpop.eup %1695  ;;  %v1563_v41 = vld [vmem:[#allocation10 + $0x8] sm:$0xff]  ;;  %v1562_v42 = vld [vmem:[#allocation10] sm:$0xff] }
 0x2df   : > { %v1072_v48 = vmul.f32 %v1042_v46, %v973_v45  ;;  %v1056_v49 = vsel %vm1053_vm11, %v1055_v44, %v1051_v47  ;;  %v1017_v8 = vsub.f32 1.0, %v1016_v7  ;;  %v1136_v32 = vmul.f32 32.0, %v1696_v31  ;;  %1199 = vmatpush.bf16.msra.mxu3 %v1563_v41  ;;  %v1677_v41 = vld [vmem:[%s2369_s11] ss:$0 sm:$0xff] }
 0x2e0   : > { %v992_v51 = vpop.f32.mrf.mxu0 }
 0x2e1   : > { %v1073_v52 = vmul.f32 %v1056_v49, %v992_v51  ;;  %1076 = vrot.lane.b32.xlu2 %v1072_v48, %s1932_s7  ;;  %v1018_v9 = vmul.f32 %v1694_v6, %v1017_v8  ;;  %v1137_v33 = vsub.f32 1.0, %v1136_v32  ;;  %s1936_s7 = smov 64  }
 0x2e3   : > { %1080 = vrot.lane.b32.xlu0 %v1073_v52, %s1933_s16  ;;  %v1019_v10 = vadd.f32 %v1694_v6, %v1018_v9  ;;  %v1138_v34 = vmul.f32 %v1696_v31, %v1137_v33  ;;  %1200 = vmatpush.bf16.msra.mxu3 %v1562_v42  ;;  %v1673_v52 = vld [vmem:[%s2364_s0] ss:$0 sm:$0xff]  ;;  %s1553_s0 = sshll.u32 %s1911_s27, 3  ;;  %s675_s27 = scalar_lea.vmem [#allocation12], %s1488_s21 }
 0x2e4   : > { %s1331_s26 = scalar_lea.hbm %s2370_s24, %s1553_s0  ;;  %s1845_s21 = scalar_lea.hbm %s2371_s10, 16 }
 0x2e5   : > { %v1023_v13 = vsel %vm1022_vm4, %v1694_v6, %v1019_v10  ;;  %v1139_v35 = vadd.f32 %v1696_v31, %v1138_v34  ;;  %v1564_v6 = vld [vmem:[%s2366_s9] sm:$0xff]  ;;  %s1335_s16 = sshll.u32 %s1331_s26, 4  ;;  %s1336_s16 = int_to_ptr.hbm [resolvable:$true] %s1335_s16 }
 0x2e6   : > { %v975_v56 = vpop.f32.mrf.mxu3  ;;  %v1028_v15 = vsel %vm1025_vm5, %v1027_v14, %v1023_v13  ;;  %s1839_s30 = sshra.s32 %s1336_s16, 4  ;;  %s1840_s30 = int_to_ptr.hbm [resolvable:$true] %s1839_s30 }
 0x2e7   : > { %s1841_s18 = scalar_lea.hbm %s1840_s30, 8  ;;  %p1846_p11 = scmp.lt.s32.totalorder %s1840_s30, %s2371_s10 }
 0x2e8   : > { %v994_v58 = vpop.f32.mrf.mxu0  ;;  %p1842_p1 = scmp.ne.s32.totalorder %s1840_s30, %s1841_s18  ;;  %p1847_p12 = scmp.lt.s32.totalorder %s1845_s21, %s1841_s18 }
 0x2ea   : > { %v1011_v60 = vpop.f32.mrf.mxu1  ;;  %p1843_p9 = pnand %p1842_p1, %p2101_p2  ;;  %p1848_p13 = por %p1847_p12, %p1846_p11 }
 0x2eb   : > { %v1074_v62 = vmul.f32 %v1070_v61, %v1011_v60  ;;  %v1566_v60 = vld [vmem:[%s2366_s9 + $0x10] sm:$0xff]  ;;  %v1565_v61 = vld [vmem:[%s2366_s9 + $0x8] sm:$0xff] }
 0x2ec   : > { %1277 = vmatpush.bf16.msrb.mxu0 %v1566_v60  ;;  %p1844_p10 = pneg %p1843_p9 }
 0x2ed   : > { %1084 = vrot.lane.b32.xlu1 %v1074_v62, %s1934_s23  ;;  %v1675_v62 = vld [vmem:[%s2367_s19] ss:$0 sm:$0xff]  ;;  %s2373_s19 = sld [smem:[#allocation35_spill]]  ;;  %s1320_s23 = scalar_lea.sflag [#allocation6], %s2127_s13 }
 0x2ee   : > { %p1849_p0 = pnand %p1848_p13, %p1844_p10 }
 0x2f0   : > { %1278 = vmatpush.bf16.msrb.mxu0 %v1565_v61 }
 0x2f2   : > { %v1013_v63 = vpop.f32.mrf.mxu1 }
 0x2f4   : > { %1279 = vmatpush.bf16.msrb.mxu0 %v1564_v6 }
 0x2f6   : > { %v954_v0 = vpop.f32.mrf.mxu2 }
 0x2f7   : > { %v1071_v17 = vmul.f32 %v1028_v15, %v954_v0 }
 0x2fe   : > { %v956_v1 = vpop.f32.mrf.mxu2 }
 0x33b   : > { %v1077_v16 = vpop.permute.xlu2 %1076 }
 0x33c   : > { %v1087_v19 = vsel %vm817_vm2, %v1071_v17, %v1077_v16  ;;  %vm1140_vm2 = vweird.f32 %v1696_v31 }
 0x33d   : > { %v2229_v36 = vsel %vm1140_vm2, %v1696_v31, %v1139_v35 }
 0x355   : > { %v1081_v18 = vpop.permute.xlu0 %1080 }
 0x356   : > { %v1089_v20 = vsel %vm1088_vm6, %v1087_v19, %v1081_v18 }
 0x35f   : > { %v1085_v21 = vpop.permute.xlu1 %1084 }
 0x360   : > { %v1091_v22 = vsel %vm1090_vm7, %v1089_v20, %v1085_v21  ;;  %v1676_v21 = vld [vmem:[%s2368_s20] ss:$0 sm:$0xff] }
 0x361   : > { %v1092_v23 = vpack.c.bf16 %v1091_v22, %v1091_v22 }
 0x363   : > { %1524 = vmatmul.msk.bf16.vlgmr.msra.gmra.mxu2 %vm710_vm0, %v1092_v23 }
 0x3e6   : > { %v1125_v25 = vpop.f32.mrf.mxu2 }
 0x3e7   : > { %v1126_v26 = vadd.f32 %v1672_v24, %v1125_v25 }
 0x3e9   : > { %v1129_v27 = vadd.f32 %v1126_v26, %v2167_v4 }
 0x3eb   : > { %v1132_v28 = vsel %vm710_vm0, %v1129_v27, 0.0 }
 0x3ec   : > { %1133 = vadd.xlane.f32.xlu2 %v1132_v28 }
 0x3ee   : > { %v1127_v29 = vpop.f32.mrf.mxu2 }
 0x45f   : > { %v1134_v37 = vpop.xlane.xlu2 %1133 }
 0x460   : > { %v1142_v38 = vmul.f32 %v2229_v36, %v1134_v37 }
 0x462   : > { %v1143_v39 = vsub.f32 %v1129_v27, %v1142_v38 }
 0x464   : > { %v1144_v40 = vmul.f32 %v1143_v39, %v1143_v39 }
 0x466   : > { %v1145_v4 = vsel %vm710_vm0, %v1144_v40, 0.0 }
 0x467   : > { %1146 = vadd.xlane.f32.xlu0 %v1145_v4 }
 0x4da   : > { %v1147_v43 = vpop.xlane.xlu0 %1146 }
 0x4db   : > { %v1148_v44 = vmul.f32 %v1147_v43, %v2229_v36  ;;  %v1678_v43 = vld [vmem:[%s2373_s19] ss:$0 sm:$0xff] }
 0x4dd   : > { %v1149_v45 = vadd.f32 1e-05, %v1148_v44 }
 0x4df   : > { %1697 = vrsqrt.f32 %v1149_v45  ;;  %vm1156_vm9 = vweird.f32 %v1149_v45 }
 0x4e5   : > { %v1698_v46 = vpop.eup %1697 }
 0x4e6   : > { %v1151_v47 = vmul.f32 %v1698_v46, %v1149_v45  ;;  %vm1157_vm8 = vweird.f32 %v1698_v46 }
 0x4e7   : > { %vm1158_vm10 = vmor %vm1156_vm9, %vm1157_vm8 }
 0x4e8   : > { %v1152_v48 = vmul.f32 %v1698_v46, %v1151_v47 }
 0x4ea   : > { %v1153_v49 = vmul.f32 0.5, %v1152_v48 }
 0x4ec   : > { %v1154_v50 = vsub.f32 1.5, %v1153_v49 }
 0x4ee   : > { %v1155_v51 = vmul.f32 %v1698_v46, %v1154_v50 }
 0x4f0   : > { %v1159_v53 = vsel %vm1158_vm10, %v1698_v46, %v1155_v51 }
 0x4f1   : > { %v1160_v55 = vmul.f32 %v1159_v53, %v1143_v39 }
 0x4f3   : > { %v1164_v56 = vmul.f32 %v1673_v52, %v1160_v55 }
 0x4f5   : > { %v1168_v57 = vadd.f32 %v1674_v54, %v1164_v56 }
 0x4f7   : > { %v1169_v58 = vpack.c.bf16 %v1168_v57, %v1168_v57 }
 0x4f9   : > { %1533 = vmatmul.msk.bf16.vlgmr.msra.gmra.mxu3 %vm710_vm0, %v1169_v58 }
 0x57c   : > { %v1202_v63 = vpop.f32.mrf.mxu3 }
 0x57d   : > { %v1203_v0 = vadd.f32 %v1675_v62, %v1202_v63 }
 0x57f   : > { %1227 = vrot.lane.b32.xlu1 %v1203_v0, %s1936_s7  ;;  %v1534_v2 = vmul.f32 -1.442695, %v1203_v0  ;;  %s1333_s7 = sshll.u32 %s675_s27, 4  ;;  %s1334_s7 = int_to_ptr.vmem [resolvable:$true] %s1333_s7 }
 0x581   : > { %1699 = vpow2.f32 %v1534_v2 }
 0x584   : > { %v1204_v1 = vpop.f32.mrf.mxu3 }
 0x587   : > { %v1700_v3 = vpop.eup %1699 }
 0x588   : > { %v1209_v5 = vadd.f32 1.0, %v1700_v3 }
 0x58a   : > { %1701 = vrcp.f32 %v1209_v5  ;;  %v1221_v12 = vand.u32 2147483648, %v1209_v5  ;;  %vm1215_vm12 = vweird.f32 %v1209_v5  ;;  %v1219_v13 = vand.u32 2147483647, %v1209_v5 }
 0x58c   : > { %v1222_v15 = vor.u32 1.1754944e-38, %v1221_v12  ;;  %vm1220_vm14 = vcmp.eq.f32.partialorder %v1219_v13, 8.507059e+37 }
 0x590   : > { %v1702_v7 = vpop.eup %1701 }
 0x591   : > { %v1211_v8 = vmul.f32 %v1702_v7, %v1209_v5  ;;  %vm1216_vm11 = vweird.f32 %v1702_v7 }
 0x592   : > { %vm1217_vm13 = vmor %vm1215_vm12, %vm1216_vm11 }
 0x593   : > { %v1212_v9 = vsub.f32 1.0, %v1211_v8 }
 0x595   : > { %v1213_v10 = vmul.f32 %v1702_v7, %v1212_v9 }
 0x597   : > { %v1214_v11 = vadd.f32 %v1702_v7, %v1213_v10 }
 0x599   : > { %v1218_v14 = vsel %vm1217_vm13, %v1702_v7, %v1214_v11 }
 0x59a   : > { %v1223_v16 = vsel %vm1220_vm14, %v1222_v15, %v1218_v14 }
 0x59b   : > { %v1225_v17 = vmul.f32 %v1223_v16, %v1203_v0 }
 0x5f1   : > { %v1228_v18 = vpop.permute.xlu1 %1227 }
 0x5f2   : > { %v1230_v19 = vmul.f32 %v1228_v18, %v1225_v17 }
 0x5f4   : > { %v1231_v20 = vpack.c.bf16 %v1230_v19, %v1230_v19 }
 0x5f6   : > { %1551 = vmatmul.msk.bf16.vlgmr.msrb.gmra.mxu0 %vm1268_vm15, %v1231_v20 }
 0x673   : > { %v1281_v22 = vpop.f32.mrf.mxu0 }
 0x674   : > { %v1282_v23 = vadd.f32 %v1676_v21, %v1281_v22 }
 0x676   : > { %v1285_v24 = vadd.f32 %v1282_v23, %v1168_v57 }
 0x678   : > { %v1288_v25 = vsel %vm710_vm0, %v1285_v24, 0.0 }
 0x679   : > { %1289 = vadd.xlane.f32.xlu1 %v1288_v25 }
 0x67b   : > { %v1283_v26 = vpop.f32.mrf.mxu0 }
 0x6ec   : > { %v1290_v27 = vpop.xlane.xlu1 %1289 }
 0x6ed   : > { %v1291_v28 = vmul.f32 %v1290_v27, %v2229_v36 }
 0x6ef   : > { %v1292_v29 = vsub.f32 %v1285_v24, %v1291_v28 }
 0x6f1   : > { %v1293_v30 = vmul.f32 %v1292_v29, %v1292_v29 }
 0x6f3   : > { %v1294_v31 = vsel %vm710_vm0, %v1293_v30, 0.0 }
 0x6f4   : > { %1295 = vadd.xlane.f32.xlu2 %v1294_v31 }
 0x767   : > { %v1296_v32 = vpop.xlane.xlu2 %1295 }
 0x768   : > { %v1297_v33 = vmul.f32 %v1296_v32, %v2229_v36 }
 0x76a   : > { %v1298_v34 = vadd.f32 1e-05, %v1297_v33 }
 0x76c   : > { %1703 = vrsqrt.f32 %v1298_v34  ;;  %vm1305_vm3 = vweird.f32 %v1298_v34 }
 0x772   : > { %v1704_v35 = vpop.eup %1703 }
 0x773   : > { %v1300_v37 = vmul.f32 %v1704_v35, %v1298_v34  ;;  %vm1306_vm1 = vweird.f32 %v1704_v35 }
 0x774   : > { %vm1307_vm4 = vmor %vm1305_vm3, %vm1306_vm1 }
 0x775   : > { %v1301_v38 = vmul.f32 %v1704_v35, %v1300_v37 }
 0x777   : > { %v1302_v39 = vmul.f32 0.5, %v1301_v38 }
 0x779   : > { %v1303_v40 = vsub.f32 1.5, %v1302_v39 }
 0x77b   : > { %v1304_v4 = vmul.f32 %v1704_v35, %v1303_v40 }
 0x77d   : > { %v1308_v36 = vsel %vm1307_vm4, %v1704_v35, %v1304_v4 }
 0x77e   : > { %v1309_v42 = vmul.f32 %v1308_v36, %v1292_v29 }
 0x780   : > { %v1313_v44 = vmul.f32 %v1677_v41, %v1309_v42 }
 0x782   : > { %v1317_v45 = vadd.f32 %v1678_v43, %v1313_v44 }
 0x784   : > { %1318 = vst.msk [vmem:[%s675_s27] sm:$0xff] %vm710_vm0, %v1317_v45 }
 0x785   : > { %1852 = shalt.err (!%p1849_p0)
}
 0x786   : > { %1580 = dma.vmem_to_hbm [thread:$0]  (%p2101_p2), %s1334_s7, 128, %s1336_s16, %s1320_s23  }
 0x787 PF: > { %s2374_s13 = sld [smem:[#allocation18_spill]]  ;;  %p1597_p4 = pnand %p1478_p6, %p2108_p5 }
 0x789   : > { %p1598_p7 = pneg %p1597_p4 }
 0x78d   : > { %s1347_s14 = sand.u32 1, %s2374_s13  }
 0x78e   : > { %s1348_s15 = scalar_lea.sflag [#allocation6], %s1347_s14 }
 0x78f   : > { %1894 = dma.done.wait (%p1598_p7), %s1348_s15, 128  }
 0x790   : > { %1896 = vsyncadd (%p1598_p7), %s1348_s15, 4294967168  ;;  %s37_s29 = sadd.s32 1, %s1919_s29   ;;  %s2376_s26 = sld [smem:[#allocation19_spill]] }
 0x791   : > { %p34_p8 = scmp.ge.s32.totalorder %s37_s29, 4   ;;  %s2377_s12 = sld [smem:[#allocation23_spill]] }
 0x792   : > { %s2378_s27 = sld [smem:[#allocation20_spill]]  ;;  %s2380_s24 = smov %s1903_s25 }
 0x793   : > { %s2379_s28 = sld [smem:[#allocation21_spill]]  ;;  %36 = sbr.rel (!%p34_p8) target bundleno = 22 (0x16), region = 167 }
 0x796   : > { %s2381_s25 = smov %s2376_s26 }
 0x797   : > { %s2382_s26 = smov %s2377_s12 }
 0x798   :  { %1354 = vsyncpa [#allocation5], 1 }
 0x799   :  { %1356 = vsyncpa [#allocation5 + $0x1], 1 }
 0x79a   :  { %1357 = vsyncpa [#allocation8], 1 }
 0x79b   :  { %1359 = vsyncpa [#allocation8 + $0x1], 1 }
 0x79c   :  { %1360 = vsyncpa [#allocation11], 1 }
 0x79d   :  { %1361 = vsyncpa [#allocation6], 1 }
 0x79e   :  { %1363 = vsyncpa [#allocation6 + $0x1], 1 }

// kernel: tpu_custom_call.1
= control target key start
LH: loop header
LB: loop body
LE: loop exit
PB: predicated region body
PF: predicated region fallthrough
CT: control target
= control target key end

     0   :  { %s2309_s0 = inlined_call_operand.vmem [shape: f32[2,8,32], index: 0, kind: input, shape index: {}]   ;;  %s2310_s1 = inlined_call_operand.hbm [shape: bf16[2,8,32], index: 1, kind: input, shape index: {}]   ;;  %s2311_s2 = inlined_call_operand.hbm [shape: bf16[2,8,8], index: 2, kind: input, shape index: {}]   ;;  %s2312_s3 = inlined_call_operand.vmem [shape: bf16[32,32], index: 3, kind: input, shape index: {}]   ;;  %s2313_s4 = inlined_call_operand.vmem [shape: f32[1,32], index: 4, kind: input, shape index: {}]   ;;  %s2314_s5 = inlined_call_operand.vmem [shape: bf16[32,64], index: 5, kind: input, shape index: {}]   ;;  %s2315_s6 = inlined_call_operand.vmem [shape: f32[1,64], index: 6, kind: input, shape index: {}]   ;;  %s2316_s7 = inlined_call_operand.hbm [shape: bf16[32,32], index: 7, kind: input, shape index: {}]   ;;  %s2317_s8 = inlined_call_operand.vmem [shape: f32[1,32], index: 8, kind: input, shape index: {}]   ;;  %s2318_s9 = inlined_call_operand.vmem [shape: f32[1,32], index: 9, kind: input, shape index: {}]   ;;  %s2319_s10 = inlined_call_operand.vmem [shape: f32[1,32], index: 10, kind: input, shape index: {}]   ;;  %s2320_s11 = inlined_call_operand.hbm [shape: bf16[32,128], index: 11, kind: input, shape index: {}]   ;;  %s2321_s12 = inlined_call_operand.vmem [shape: f32[1,128], index: 12, kind: input, shape index: {}]   ;;  %s2322_s13 = inlined_call_operand.vmem [shape: bf16[64,32], index: 13, kind: input, shape index: {}]   ;;  %s2323_s14 = inlined_call_operand.vmem [shape: f32[1,32], index: 14, kind: input, shape index: {}]   ;;  %s2324_s15 = inlined_call_operand.vmem [shape: f32[1,32], index: 15, kind: input, shape index: {}]   ;;  %s2325_s16 = inlined_call_operand.vmem [shape: f32[1,32], index: 16, kind: input, shape index: {}]   ;;  %s2326_s17 = inlined_call_operand.hbm [shape: f32[2,8,32], index: 17, kind: output, shape index: {}]  }
   0x1   :  { %2336 = sst [smem:[#allocation25_spill]] %s2309_s0 }
   0x2   :  { %2337 = sst [smem:[#allocation26_spill]] %s2310_s1 }
   0x3   :  { %2338 = sst [smem:[#allocation27_spill]] %s2316_s7 }
   0x4   :  { %2339 = sst [smem:[#allocation28_spill]] %s2318_s9 }
   0x5   :  { %2340 = sst [smem:[#allocation29_spill]] %s2319_s10 }
   0x6   :  { %2341 = sst [smem:[#allocation30_spill]] %s2320_s11 }
   0x7   :  { %2342 = sst [smem:[#allocation31_spill]] %s2321_s12 }
   0x8   :  { %2343 = sst [smem:[#allocation32_spill]] %s2322_s13 }
   0x9   :  { %2344 = sst [smem:[#allocation33_spill]] %s2323_s14 }
   0xa   :  { %2345 = sst [smem:[#allocation34_spill]] %s2324_s15 }
   0xb   :  { %2346 = sst [smem:[#allocation35_spill]] %s2325_s16 }
   0xc   :  { %2347 = sst [smem:[#allocation36_spill]] %s2326_s17 }
   0xd   :  { %22 = vsyncpa [#allocation5], 0 }
   0xe   :  { %24 = vsyncpa [#allocation5 + $0x1], 0 }
   0xf   :  { %25 = vsyncpa [#allocation8], 0 }
  0x10   :  { %27 = vsyncpa [#allocation8 + $0x1], 0 }
  0x11   :  { %28 = vsyncpa [#allocation11], 0 }
  0x12   :  { %29 = vsyncpa [#allocation6], 0 }
  0x13   :  { %31 = vsyncpa [#allocation6 + $0x1], 0  ;;  %s2027_s24 = smov 0   ;;  %s2029_s25 = smov 0  }
  0x14   :  { %s2031_s26 = smov 0   ;;  %s2033_s27 = smov 0  }
  0x15   :  { %s2035_s28 = smov 0   ;;  %s2037_s29 = smov 0  }
  0x16 LB: > { %2348 = sst [smem:[#allocation18_spill]] %s1899_s24  ;;  %s2058_s0 = sadd.s32 4294967295, %s1919_s29   ;;  %s1919_s29 = sphi %s2037_s29, %s37_s29   ;;  %s1915_s28 = sphi %s2035_s28, %s2379_s28   ;;  %s1911_s27 = sphi %s2033_s27, %s2378_s27   ;;  %s1907_s26 = sphi %s2031_s26, %s2382_s26   ;;  %s1903_s25 = sphi %s2029_s25, %s2381_s25   ;;  %s1899_s24 = sphi %s2027_s24, %s2380_s24  }
  0x17   : > { %2349 = sst [smem:[#allocation19_spill]] %s1907_s26  ;;  %p1475_p0 = scmp.ge.s32.totalorder %s1919_s29, 1 }
  0x18   : > { %2350 = sst [smem:[#allocation20_spill]] %s1915_s28  ;;  %p98_p1 = scmp.eq.s32.totalorder %s2058_s0, 0 }
  0x19   : > { %p458_p2 = scmp.lt.s32.totalorder %s1919_s29, 3  ;;  %s2351_s7 = sld [smem:[#allocation27_spill]] }
  0x1a   : > { %s1921_s20 = smov [#allocation9]   ;;  %p1478_p6 = scmp.ge.s32.totalorder %s1919_s29, 2 }
  0x1b   : > { %p2066_p3 = pnand %p1475_p0, %p458_p2  ;;  %s483_s21 = sshll.u32 %s1921_s20, 4  ;;  %s484_s21 = int_to_ptr.vmem [resolvable:$true] %s483_s21 }
  0x1c   : > { %s2353_s11 = sld [smem:[#allocation30_spill]]  ;;  %s1922_s18 = smov 64  }
  0x1d   : > { %p1582_p4 = pneg %p2066_p3  ;;  %s1924_s20 = smov [#allocation10]  }
  0x1e   : > { %s506_s16 = sshll.u32 %s1924_s20, 4  ;;  %s1474_s17 = sadd.s32 4294967294, %s1919_s29   ;;  %s507_s16 = int_to_ptr.vmem [resolvable:$true] %s506_s16 }
  0x1f   : > { %s481_s19 = sshll.u32 %s2351_s7, 4  ;;  %p1583_p5 = pnand %p1582_p4, %p98_p1  ;;  %s482_s19 = int_to_ptr.hbm [resolvable:$true] %s481_s19 }
  0x20   : > { %s1923_s7 = smov 4   ;;  %s49_s15 = sadd.s32 1, %s1915_s28 }
  0x21   : > { %1585 = dma.hbm_to_vmem [thread:$0]  (!%p1583_p5), %s482_s19, 256, %s484_s21, [#allocation8], %s1922_s18, %s1922_s18, %s1923_s7  }
  0x22   : > { %s504_s30 = sshll.u32 %s2353_s11, 4  ;;  %p51_p7 = scmp.ge.s32.totalorder %s49_s15, 2  ;;  %s505_s30 = int_to_ptr.hbm [resolvable:$true] %s504_s30 }
  0x23   : > { %1588 = dma.hbm_to_vmem [thread:$0]  (!%p1583_p5), %s505_s30, 256, %s507_s16, [#allocation11], %s1922_s18, %s1922_s18, %s1923_s7  }
  0x24   : > { %s84_s22 = sadd.s32 1, %s1907_s26  ;;  %p91_p8 = scmp.ne.s32.totalorder %s1907_s26, %s1903_s25 }
  0x25   : > { %p92_p9 = scmp.eq.s32.totalorder %s1919_s29, 0  ;;  %s2384_s15 = smov (%p51_p7, %s49_s15), 0 }
  0x26   : > { %2354 = sst [smem:[#allocation21_spill]] %s2384_s15  ;;  %p97_p11 = scmp.ne.s32.totalorder %s1903_s25, %s1899_s24 }
  0x27   : > { %p2086_p10 = por %p92_p9, %p91_p8  ;;  %s81_s21 = ssub.s32 %s1915_s28, %s2384_s15 }
  0x28   : > { %p445_p12 = scmp.eq.s32.totalorder %s2058_s0, 1  ;;  %p82_p13 = scmp.eq.s32.totalorder %s81_s21, 0 }
  0x29   : > { %p2097_p0 = por %p98_p1, %p97_p11  ;;  %p451_p4 = scmp.eq.s32.totalorder %s1474_s17, 1 }
  0x2a   : > { %p2101_p2 = por %p445_p12, %p91_p8  ;;  %p1602_p7 = scmp.lt.s32.totalorder %s1919_s29, 2 }
  0x2b   : > { %s2106_s23 = scalar_select %p82_p13, %s1907_s26, %s84_s22  }
  0x2c   : > { %s2357_s16 = scalar_select %p2101_p2, 1, 0 }
  0x2d   : > { %2359 = sst [smem:[#allocation23_spill]] %s2106_s23  ;;  %p2108_p5 = por %p451_p4, %p97_p11 }
  0x2e   : > { %2358 = sst [smem:[#allocation22_spill]] %s2357_s16  ;;  %s545_s18 = sand.u32 1, %s1907_s26  }
  0x2f   : > { %s2360_s30 = scalar_select %p2108_p5, 1, 0 }
  0x30   : > { %s1480_s20 = sshll.u32 %s1915_s28, 2  ;;  %s1479_s21 = sshll.u32 %s545_s18, 2 }
  0x31   : > { %2361 = sst [smem:[#allocation24_spill]] %s2360_s30  ;;  %s549_s13 = scalar_lea.vmem [#allocation4], %s1479_s21 }
  0x32   : > { %s2362_s24 = sld [smem:[#allocation26_spill]]  ;;  %s557_s10 = sshll.u32 %s549_s13, 4  ;;  %s558_s10 = int_to_ptr.vmem [resolvable:$true] %s557_s10 }
  0x33   : > { %p1590_p8 = pnand %p1602_p7, %p2086_p10  ;;  %s573_s23 = scalar_lea.hbm %s2311_s2, %s1480_s20 }
  0x34   : > { %s564_s30 = sand.u32 1, %s1919_s29   ;;  %s546_s16 = scalar_lea.sflag [#allocation5], %s545_s18 }
  0x35   : > { %s575_s28 = sshll.u32 %s573_s23, 4  ;;  %s568_s26 = scalar_lea.vmem [#allocation7], %s1479_s21  ;;  %s576_s28 = int_to_ptr.hbm [resolvable:$true] %s575_s28 }
  0x36   : > { %s577_s9 = sshll.u32 %s568_s26, 4  ;;  %s565_s11 = scalar_lea.sflag [#allocation8], %s564_s30  ;;  %s578_s9 = int_to_ptr.vmem [resolvable:$true] %s577_s9 }
  0x37   : > { %1595 = dma.hbm_to_vmem [thread:$0]  (!%p1590_p8), %s576_s28, 64, %s578_s9, %s565_s11  }
  0x38   : > { %s553_s14 = scalar_lea.hbm %s2362_s24, %s1480_s20  ;;  %586 = sbr.rel (%p2066_p3) target bundleno = 1927 (0x787), region = 88 }
  0x39   : > { %s555_s12 = sshll.u32 %s553_s14, 4  ;;  %s2127_s13 = sand.u32 (!%p2066_p3), 1, %s1903_s25   ;;  %s556_s12 = int_to_ptr.hbm [resolvable:$true] %s555_s12 }
  0x3a   : > { %1592 = dma.hbm_to_vmem [thread:$0]  (!%p1590_p8), %s556_s12, 64, %s558_s10, %s546_s16  }
  0x3b   : > { %s1484_s14 = sshll.u32 (!%p2066_p3), %s2127_s13, 2  ;;  %s589_s15 = scalar_lea.sflag (!%p2066_p3), [#allocation5], %s2127_s13 }
  0x3c   : > { %s592_s24 = scalar_lea.vmem (!%p2066_p3), [#allocation4], %s1484_s14 }
  0x3d   : > { %1878 = dma.done.wait (%p2097_p0), %s589_s15, 64  }
  0x3e   : > { %1880 = vsyncadd (%p2097_p0), %s589_s15, 4294967232  ;;  %s598_s9 = sand.u32 1, %s2058_s0   ;;  %s2136_s12 = scalar_lea.vmem [#allocation7], %s1484_s14 }
  0x3f   : > { %s599_s10 = scalar_lea.sflag [#allocation8], %s598_s9 }
  0x40   : > { %1882 = dma.done.wait (%p2097_p0), %s599_s10, 64  }
  0x41   : > { %1884 = vsyncadd (%p2097_p0), %s599_s10, 4294967232 }
  0x42   : > { %1886 = dma.done.wait (%p98_p1), [#allocation8], 256  }
  0x43   : > { %1888 = vsyncadd (%p98_p1), [#allocation8], 4294967040 }
  0x44   : > { %1890 = dma.done.wait (%p98_p1), [#allocation11], 256  }
  0x45   : > { %1892 = vsyncadd (%p98_p1), [#allocation11], 4294967040  ;;  %p676_p3 = scmp.lt.s32.totalorder %s1911_s27, 1  ;;  %s2363_s7 = sld [smem:[#allocation25_spill]]  ;;  %v1557_v0 = vld [vmem:[%s2314_s5 + $0x8] sm:$0xff]  ;;  %v1556_v1 = vld [vmem:[%s2314_s5] sm:$0xff] }
  0x46   : > { %v1559_v2 = vld [vmem:[%s2312_s3 + $0x8] sm:$0xff]  ;;  %v1558_v3 = vld [vmem:[%s2312_s3] sm:$0xff]  ;;  %720 = vmatpush.bf16.msra.mxu0 %v1557_v0  ;;  %vm710_vm0 = vcmask 261120   ;;  %vm728_vm1 = vcmask 60416   ;;  %s1926_s10 = smov 120   ;;  %vm817_vm2 = vcmask 64512  }
  0x47   : > { %s677_s26 = scalar_select %p676_p3, %s1911_s27, 1  ;;  %796 = vmatpush.bf16.msra.mxu1 %v1559_v2  ;;  %v689_v5 = vld [vmem:[%s592_s24] sm:$0xf]  ;;  %vm941_vm3 = vcmask 1043456   ;;  %v811_v36 = vld [vmem:[%s2136_s12] sm:$0xf] }
  0x48   : > { %v1670_v7 = vld [vmem:[%s2315_s6] ss:$0 sm:$0xff]  ;;  %s1925_s24 = smov 104   ;;  %v812_v37 = vunpack.c.l.bf16 %v811_v36  ;;  %s1929_s12 = smov 72  }
  0x49   : > { %s1489_s28 = sshll.u32 %s677_s26, 3  ;;  %v1671_v8 = vld [vmem:[%s2313_s4] ss:$0 sm:$0xff]  ;;  %s1927_s26 = smov 112  }
  0x4a   : > { %721 = vmatpush.bf16.msra.mxu0 %v1556_v1  ;;  %s1930_s1 = smov 80   ;;  %s1931_s19 = smov 96  }
  0x4b   : > { %s682_s16 = scalar_lea.vmem %s2363_s7, %s1489_s28  ;;  %797 = vmatpush.bf16.msra.mxu1 %v1558_v3  ;;  %s1928_s28 = smov 88  }
  0x4c   : > { %v2167_v4 = vld [vmem:[%s682_s16] sm:$0xff]  ;;  %s1932_s7 = smov 8   ;;  %s1933_s16 = smov 16  }
  0x4d   : > { %v765_v6 = vpack.c.bf16 %v2167_v4, %v2167_v4  ;;  %1498 = vmatmul.msk.bf16.vlgmr.msra.gmra.mxu0 %vm710_vm0, %v689_v5  ;;  %s1934_s23 = smov 24   ;;  %s2364_s0 = sld [smem:[#allocation28_spill]] }
  0x4e   : > { %s2365_s11 = sld [smem:[#allocation29_spill]]  ;;  %s1488_s21 = sshll.u32 %s2127_s13, 3 }
  0x4f   : > { %1507 = vmatmul.msk.bf16.vlgmr.msra.gmra.mxu1 %vm710_vm0, %v765_v6  ;;  %s2366_s9 = sld [smem:[#allocation32_spill]] }
  0x50   : > { %s2368_s20 = sld [smem:[#allocation33_spill]] }
  0xca   : > { %v723_v9 = vpop.f32.mrf.mxu0 }
  0xcb   : > { %v724_v10 = vadd.f32 %v1670_v7, %v723_v9 }
  0xcc   : > { %v799_v11 = vpop.f32.mrf.mxu1 }
  0xcd   : > { %v800_v12 = vadd.f32 %v1671_v8, %v799_v11  ;;  %v2179_v13 = vpack.c.bf16 %v724_v10, %v724_v10 }
  0xcf   : > { %v803_v14 = vpack.c.bf16 %v800_v12, %v800_v12  ;;  %755 = vrot.lane.b32.xlu1 %v2179_v13, %s1925_s24  ;;  %735 = vrot.lane.b32.xlu0 %v2179_v13, %s1926_s10  ;;  %729 = vst.msk [vmem:[#allocation2] sm:$0xf] %vm728_vm1, %v2179_v13 }
  0xd1   : > { %807 = vrot.lane.b32.xlu2 %v803_v14, %s1927_s26 }
  0xd2   : > { %v725_v15 = vpop.f32.mrf.mxu0 }
  0xd4   : > { %v801_v16 = vpop.f32.mrf.mxu1 }
  0xd6   : > { %v813_v17 = vld [vmem:[#allocation2] sm:$0xf] }
  0xd7   : > { %745 = vrot.lane.b32.xlu0 %v2179_v13, %s1927_s26  ;;  %805 = vrot.lane.b32.xlu1 %v803_v14, %s1926_s10  ;;  %v822_v18 = vsel %vm817_vm2, %v813_v17, 0 }
  0xd8   : > { %831 = vmatpush.bf16.xpose.msra.mxu2 %v822_v18 }
  0xd9   : > { %809 = vrot.lane.b32.xlu2 %v803_v14, %s1925_s24  ;;  %s2370_s24 = sld [smem:[#allocation36_spill]] }
  0xdf   : > { %740 = vrot.lane.b32.xlu1 %v2179_v13, %s1928_s28  ;;  %1508 = vmatmul.msk.bf16.vlgmr.msra.gmra.mxu2 %vm817_vm2, %v803_v14  ;;  %s2371_s10 = smov %s2370_s24 }
 0x12b   : > { %v808_v21 = vpop.permute.xlu2 %807 }
 0x133   : > { %v810_v28 = vpop.permute.xlu2 %809 }
 0x141   : > { %v756_v19 = vpop.permute.xlu1 %755  ;;  %v736_v20 = vpop.permute.xlu0 %735 }
 0x142   : > { %759 = vst.msk [vmem:[#allocation2 + $0xc] sm:$0xf] %vm728_vm1, %v756_v19 }
 0x143   : > { %739 = vst.msk [vmem:[#allocation2 + $0x4] sm:$0xf] %vm728_vm1, %v736_v20 }
 0x149   : > { %v746_v22 = vpop.permute.xlu0 %745  ;;  %v806_v23 = vpop.permute.xlu1 %805  ;;  %v816_v24 = vld [vmem:[#allocation2 + $0xc] sm:$0xf] }
 0x14a   : > { %749 = vst.msk [vmem:[#allocation2 + $0x8] sm:$0xf] %vm728_vm1, %v746_v22  ;;  %v814_v25 = vld [vmem:[#allocation2 + $0x4] sm:$0xf]  ;;  %v879_v26 = vsel %vm817_vm2, %v816_v24, 0 }
 0x14b   : > { %v841_v27 = vsel %vm817_vm2, %v814_v25, 0  ;;  %888 = vmatpush.bf16.xpose.msrb.mxu1 %v879_v26 }
 0x14c   : > { %850 = vmatpush.bf16.xpose.msra.mxu3 %v841_v27 }
 0x151   : > { %v741_v29 = vpop.permute.xlu1 %740  ;;  %v815_v30 = vld [vmem:[#allocation2 + $0x8] sm:$0xf] }
 0x152   : > { %744 = vst.msk [vmem:[#allocation3 + $0x4] sm:$0xf] %vm728_vm1, %v741_v29  ;;  %1511 = vmatmul.msk.bf16.vlgmr.msrb.gmra.mxu1 %vm817_vm2, %v810_v28  ;;  %v860_v31 = vsel %vm817_vm2, %v815_v30, 0 }
 0x153   : > { %1509 = vmatmul.msk.bf16.vlgmr.msra.gmra.mxu3 %vm817_vm2, %v806_v23  ;;  %869 = vmatpush.bf16.xpose.msrb.mxu0 %v860_v31 }
 0x159   : > { %v935_v32 = vld [vmem:[#allocation3 + $0x4] sm:$0xf] }
 0x15a   : > { %1510 = vmatmul.msk.bf16.vlgmr.msrb.gmra.mxu0 %vm817_vm2, %v808_v21  ;;  %v962_v33 = vsel %vm941_vm3, %v935_v32, 0 }
 0x15b   : > { %971 = vmatpush.bf16.msrb.mxu3 %v962_v33 }
 0x162   : > { %v833_v34 = vpop.f32.mrf.mxu2 }
 0x163   : > { %v834_v41 = vadd.f32 %v833_v34, %v812_v37 }
 0x165   : > { %v894_v49 = vsel %vm817_vm2, %v834_v41, -inf }
 0x16a   : > { %v835_v35 = vpop.f32.mrf.mxu2 }
 0x1cf   : > { %v890_v38 = vpop.f32.mrf.mxu1 }
 0x1d0   : > { %v891_v39 = vadd.f32 %v890_v38, %v812_v37 }
 0x1d2   : > { %v903_v40 = vsel %vm817_vm2, %v891_v39, -inf }
 0x1d3   : > { %904 = vmax.xlane.f32.xlu1 %v903_v40 }
 0x1d6   : > { %v852_v42 = vpop.f32.mrf.mxu3 }
 0x1d7   : > { %v853_v43 = vadd.f32 %v852_v42, %v812_v37  ;;  %v871_v44 = vpop.f32.mrf.mxu0  ;;  %v892_v45 = vpop.f32.mrf.mxu1 }
 0x1d8   : > { %v872_v46 = vadd.f32 %v871_v44, %v812_v37 }
 0x1d9   : > { %v897_v47 = vsel %vm817_vm2, %v853_v43, -inf }
 0x1da   : > { %898 = vmax.xlane.f32.xlu0 %v897_v47  ;;  %v900_v48 = vsel %vm817_vm2, %v872_v46, -inf }
 0x1db   : > { %901 = vmax.xlane.f32.xlu2 %v900_v48  ;;  %895 = vmax.xlane.f32.xlu1 %v894_v49 }
 0x1de   : > { %v854_v50 = vpop.f32.mrf.mxu3 }
 0x1df   : > { %v873_v51 = vpop.f32.mrf.mxu0 }
 0x1ee   : > { %760 = vrot.lane.b32.xlu0 %v2179_v13, %s1929_s12 }
 0x1f3   : > { %750 = vrot.lane.b32.xlu2 %v2179_v13, %s1930_s1 }
 0x1f4   : > { %731 = vrot.lane.b32.xlu1 %v2179_v13, %s1931_s19  ;;  %s2367_s19 = sld [smem:[#allocation31_spill]] }
 0x246   : > { %v905_v52 = vpop.xlane.xlu1 %904 }
 0x247   : > { %v909_v53 = vsub.f32 %v891_v39, %v905_v52 }
 0x249   : > { %v916_v54 = vmul.f32 1.442695, %v909_v53 }
 0x24b   : > { %1679 = vpow2.f32 %v916_v54 }
 0x24d   : > { %v899_v55 = vpop.xlane.xlu0 %898 }
 0x24e   : > { %v907_v56 = vsub.f32 %v853_v43, %v899_v55  ;;  %v902_v57 = vpop.xlane.xlu2 %901  ;;  %v896_v58 = vpop.xlane.xlu1 %895 }
 0x24f   : > { %v908_v59 = vsub.f32 %v872_v46, %v902_v57  ;;  %v906_v61 = vsub.f32 %v834_v41, %v896_v58 }
 0x250   : > { %v912_v60 = vmul.f32 1.442695, %v907_v56 }
 0x251   : > { %v1680_v62 = vpop.eup %1679  ;;  %v914_v63 = vmul.f32 1.442695, %v908_v59  ;;  %v910_v1 = vmul.f32 1.442695, %v906_v61 }
 0x252   : > { %1681 = vpow2.f32 %v912_v60  ;;  %v927_v0 = vsel %vm817_vm2, %v1680_v62, 0.0  ;;  %v933_v18 = vpack.c.bf16 %v1680_v62, %v1680_v62 }
 0x253   : > { %1683 = vpow2.f32 %v914_v63  ;;  %928 = vadd.xlane.f32.xlu1 %v927_v0 }
 0x254   : > { %1685 = vpow2.f32 %v910_v1 }
 0x256   : > { %v751_v2 = vpop.permute.xlu2 %750 }
 0x257   : > { %754 = vst.msk [vmem:[#allocation3 + $0x8] sm:$0xf] %vm728_vm1, %v751_v2  ;;  %v1561_v2 = vld [vmem:[#allocation9 + $0x8] sm:$0xff] }
 0x258   : > { %v1682_v3 = vpop.eup %1681 }
 0x259   : > { %v1684_v5 = vpop.eup %1683  ;;  %v921_v6 = vsel %vm817_vm2, %v1682_v3, 0.0  ;;  %v931_v7 = vpack.c.bf16 %v1682_v3, %v1682_v3 }
 0x25a   : > { %922 = vadd.xlane.f32.xlu0 %v921_v6  ;;  %v924_v8 = vsel %vm817_vm2, %v1684_v5, 0.0  ;;  %v1686_v9 = vpop.eup %1685  ;;  %v932_v13 = vpack.c.bf16 %v1684_v5, %v1684_v5  ;;  %v1560_v5 = vld [vmem:[#allocation9] sm:$0xff] }
 0x25b   : > { %1513 = vmatmul.msk.bf16.vlgmr.msrb.gmra.mxu3 %vm817_vm2, %v931_v7  ;;  %925 = vadd.xlane.f32.xlu2 %v924_v8  ;;  %v918_v14 = vsel %vm817_vm2, %v1686_v9, 0.0  ;;  %v930_v21 = vpack.c.bf16 %v1686_v9, %v1686_v9 }
 0x25e   : > { %v936_v10 = vld [vmem:[#allocation3 + $0x8] sm:$0xf] }
 0x25f   : > { %v981_v11 = vsel %vm941_vm3, %v936_v10, 0 }
 0x260   : > { %v761_v12 = vpop.permute.xlu0 %760  ;;  %990 = vmatpush.bf16.msra.mxu0 %v981_v11 }
 0x261   : > { %764 = vst.msk [vmem:[#allocation3 + $0xc] sm:$0xf] %vm728_vm1, %v761_v12 }
 0x262   : > { %919 = vadd.xlane.f32.xlu0 %v918_v14 }
 0x263   : > { %1514 = vmatmul.msk.bf16.vlgmr.msra.gmra.mxu0 %vm817_vm2, %v932_v13 }
 0x266   : > { %v732_v15 = vpop.permute.xlu1 %731 }
 0x267   : > { %734 = vst.msk [vmem:[#allocation3] sm:$0xf] %vm728_vm1, %v732_v15 }
 0x268   : > { %v937_v16 = vld [vmem:[#allocation3 + $0xc] sm:$0xf] }
 0x269   : > { %v1000_v17 = vsel %vm941_vm3, %v937_v16, 0 }
 0x26a   : > { %1009 = vmatpush.bf16.msra.mxu1 %v1000_v17 }
 0x26d   : > { %1515 = vmatmul.msk.bf16.vlgmr.msra.gmra.mxu1 %vm817_vm2, %v933_v18 }
 0x26e   : > { %v934_v19 = vld [vmem:[#allocation3] sm:$0xf] }
 0x26f   : > { %v943_v20 = vsel %vm941_vm3, %v934_v19, 0 }
 0x270   : > { %952 = vmatpush.bf16.msrb.mxu2 %v943_v20 }
 0x273   : > { %1512 = vmatmul.msk.bf16.vlgmr.msrb.gmra.mxu2 %vm817_vm2, %v930_v21 }
 0x274   : > { %1122 = vmatpush.bf16.msra.mxu2 %v1561_v2 }
 0x278   : > { %1123 = vmatpush.bf16.msra.mxu2 %v1560_v5 }
 0x2c6   : > { %v929_v22 = vpop.xlane.xlu1 %928 }
 0x2c7   : > { %1687 = vrcp.f32 %v929_v22  ;;  %v1068_v54 = vand.u32 2147483648, %v929_v22  ;;  %vm1062_vm13 = vweird.f32 %v929_v22  ;;  %v1066_v55 = vand.u32 2147483647, %v929_v22 }
 0x2c9   : > { %v1069_v59 = vor.u32 1.1754944e-38, %v1068_v54  ;;  %vm1067_vm15 = vcmp.eq.f32.partialorder %v1066_v55, 8.507059e+37  ;;  %v1674_v54 = vld [vmem:[%s2365_s11] ss:$0 sm:$0xff]  ;;  %s2369_s11 = sld [smem:[#allocation34_spill]] }
 0x2cd   : > { %v923_v23 = vpop.xlane.xlu0 %922  ;;  %v1688_v25 = vpop.eup %1687 }
 0x2ce   : > { %1689 = vrcp.f32 %v923_v23  ;;  %v926_v24 = vpop.xlane.xlu2 %925  ;;  %v1058_v30 = vmul.f32 %v1688_v25, %v929_v22  ;;  %v1040_v33 = vand.u32 2147483648, %v923_v23  ;;  %v1038_v35 = vand.u32 2147483647, %v923_v23 }
 0x2cf   : > { %1691 = vrcp.f32 %v926_v24  ;;  %v1054_v36 = vand.u32 2147483648, %v926_v24  ;;  %v1052_v38 = vand.u32 2147483647, %v926_v24  ;;  %vm1034_vm6 = vweird.f32 %v923_v23 }
 0x2d0   : > { %v1059_v39 = vsub.f32 1.0, %v1058_v30  ;;  %v1041_v41 = vor.u32 1.1754944e-38, %v1040_v33  ;;  %vm1048_vm8 = vweird.f32 %v926_v24  ;;  %vm1039_vm9 = vcmp.eq.f32.partialorder %v1038_v35, 8.507059e+37 }
 0x2d1   : > { %v1055_v44 = vor.u32 1.1754944e-38, %v1054_v36  ;;  %vm1053_vm11 = vcmp.eq.f32.partialorder %v1052_v38, 8.507059e+37  ;;  %vm1063_vm12 = vweird.f32 %v1688_v25  ;;  %v1935_v30 = vmov 32.0  }
 0x2d2   : > { %v1060_v50 = vmul.f32 %v1688_v25, %v1059_v39  ;;  %vm1064_vm14 = vmor %vm1062_vm13, %vm1063_vm12 }
 0x2d4   : > { %v1690_v26 = vpop.eup %1689  ;;  %v1061_v53 = vadd.f32 %v1688_v25, %v1060_v50 }
 0x2d5   : > { %v1692_v27 = vpop.eup %1691  ;;  %v1030_v28 = vmul.f32 %v1690_v26, %v923_v23  ;;  %vm1035_vm4 = vweird.f32 %v1690_v26  ;;  %v920_v3 = vpop.xlane.xlu0 %919 }
 0x2d6   : > { %v1044_v29 = vmul.f32 %v1692_v27, %v926_v24  ;;  %vm1049_vm5 = vweird.f32 %v1692_v27  ;;  %vm1036_vm7 = vmor %vm1034_vm6, %vm1035_vm4  ;;  %v1065_v57 = vsel %vm1064_vm14, %v1688_v25, %v1061_v53  ;;  %1693 = vrcp.f32 %v920_v3  ;;  %v1672_v24 = vld [vmem:[%s2317_s8] ss:$0 sm:$0xff] }
 0x2d7   : > { %v1031_v31 = vsub.f32 1.0, %v1030_v28  ;;  %vm1050_vm10 = vmor %vm1048_vm8, %vm1049_vm5  ;;  %v1070_v61 = vsel %vm1067_vm15, %v1069_v59, %v1065_v57  ;;  %v1026_v11 = vand.u32 2147483648, %v920_v3  ;;  %vm1020_vm3 = vweird.f32 %v920_v3  ;;  %v1567_v59 = vld [vmem:[%s2366_s9 + $0x18] sm:$0xff] }
 0x2d8   : > { %v1045_v32 = vsub.f32 1.0, %v1044_v29  ;;  %v1024_v12 = vand.u32 2147483647, %v920_v3  ;;  %vm1088_vm6 = vcmask 130048   ;;  %1695 = vrcp.f32 %v1935_v30  ;;  %1276 = vmatpush.bf16.msrb.mxu0 %v1567_v59 }
 0x2d9   : > { %v1032_v34 = vmul.f32 %v1690_v26, %v1031_v31  ;;  %v1027_v14 = vor.u32 1.1754944e-38, %v1026_v11  ;;  %vm1268_vm15 = vcmask 523264  }
 0x2da   : > { %v1046_v37 = vmul.f32 %v1692_v27, %v1045_v32  ;;  %vm1025_vm5 = vcmp.eq.f32.partialorder %v1024_v12, 8.507059e+37 }
 0x2db   : > { %v1033_v40 = vadd.f32 %v1690_v26, %v1032_v34 }
 0x2dc   : > { %v1047_v42 = vadd.f32 %v1692_v27, %v1046_v37  ;;  %v1694_v6 = vpop.eup %1693 }
 0x2dd   : > { %v1037_v43 = vsel %vm1036_vm7, %v1690_v26, %v1033_v40  ;;  %v1016_v7 = vmul.f32 %v1694_v6, %v920_v3  ;;  %vm1021_vm1 = vweird.f32 %v1694_v6  ;;  %vm1090_vm7 = vcmask 195584  }
 0x2de   : > { %v973_v45 = vpop.f32.mrf.mxu3  ;;  %v1042_v46 = vsel %vm1039_vm9, %v1041_v41, %v1037_v43  ;;  %v1051_v47 = vsel %vm1050_vm10, %v1692_v27, %v1047_v42  ;;  %vm1022_vm4 = vmor %vm1020_vm3, %vm1021_vm1  ;;  %v1696_v31 = vpop.eup %1695  ;;  %v1563_v41 = vld [vmem:[#allocation10 + $0x8] sm:$0xff]  ;;  %v1562_v42 = vld [vmem:[#allocation10] sm:$0xff] }
 0x2df   : > { %v1072_v48 = vmul.f32 %v1042_v46, %v973_v45  ;;  %v1056_v49 = vsel %vm1053_vm11, %v1055_v44, %v1051_v47  ;;  %v1017_v8 = vsub.f32 1.0, %v1016_v7  ;;  %v1136_v32 = vmul.f32 32.0, %v1696_v31  ;;  %1199 = vmatpush.bf16.msra.mxu3 %v1563_v41  ;;  %v1677_v41 = vld [vmem:[%s2369_s11] ss:$0 sm:$0xff] }
 0x2e0   : > { %v992_v51 = vpop.f32.mrf.mxu0 }
 0x2e1   : > { %v1073_v52 = vmul.f32 %v1056_v49, %v992_v51  ;;  %1076 = vrot.lane.b32.xlu2 %v1072_v48, %s1932_s7  ;;  %v1018_v9 = vmul.f32 %v1694_v6, %v1017_v8  ;;  %v1137_v33 = vsub.f32 1.0, %v1136_v32  ;;  %s1936_s7 = smov 64  }
 0x2e3   : > { %1080 = vrot.lane.b32.xlu0 %v1073_v52, %s1933_s16  ;;  %v1019_v10 = vadd.f32 %v1694_v6, %v1018_v9  ;;  %v1138_v34 = vmul.f32 %v1696_v31, %v1137_v33  ;;  %1200 = vmatpush.bf16.msra.mxu3 %v1562_v42  ;;  %v1673_v52 = vld [vmem:[%s2364_s0] ss:$0 sm:$0xff]  ;;  %s1553_s0 = sshll.u32 %s1911_s27, 3  ;;  %s675_s27 = scalar_lea.vmem [#allocation12], %s1488_s21 }
 0x2e4   : > { %s1331_s26 = scalar_lea.hbm %s2370_s24, %s1553_s0  ;;  %s1845_s21 = scalar_lea.hbm %s2371_s10, 16 }
 0x2e5   : > { %v1023_v13 = vsel %vm1022_vm4, %v1694_v6, %v1019_v10  ;;  %v1139_v35 = vadd.f32 %v1696_v31, %v1138_v34  ;;  %v1564_v6 = vld [vmem:[%s2366_s9] sm:$0xff]  ;;  %s1335_s16 = sshll.u32 %s1331_s26, 4  ;;  %s1336_s16 = int_to_ptr.hbm [resolvable:$true] %s1335_s16 }
 0x2e6   : > { %v975_v56 = vpop.f32.mrf.mxu3  ;;  %v1028_v15 = vsel %vm1025_vm5, %v1027_v14, %v1023_v13  ;;  %s1839_s30 = sshra.s32 %s1336_s16, 4  ;;  %s1840_s30 = int_to_ptr.hbm [resolvable:$true] %s1839_s30 }
 0x2e7   : > { %s1841_s18 = scalar_lea.hbm %s1840_s30, 8  ;;  %p1846_p11 = scmp.lt.s32.totalorder %s1840_s30, %s2371_s10 }
 0x2e8   : > { %v994_v58 = vpop.f32.mrf.mxu0  ;;  %p1842_p1 = scmp.ne.s32.totalorder %s1840_s30, %s1841_s18  ;;  %p1847_p12 = scmp.lt.s32.totalorder %s1845_s21, %s1841_s18 }
 0x2ea   : > { %v1011_v60 = vpop.f32.mrf.mxu1  ;;  %p1843_p9 = pnand %p1842_p1, %p2101_p2  ;;  %p1848_p13 = por %p1847_p12, %p1846_p11 }
 0x2eb   : > { %v1074_v62 = vmul.f32 %v1070_v61, %v1011_v60  ;;  %v1566_v60 = vld [vmem:[%s2366_s9 + $0x10] sm:$0xff]  ;;  %v1565_v61 = vld [vmem:[%s2366_s9 + $0x8] sm:$0xff] }
 0x2ec   : > { %1277 = vmatpush.bf16.msrb.mxu0 %v1566_v60  ;;  %p1844_p10 = pneg %p1843_p9 }
 0x2ed   : > { %1084 = vrot.lane.b32.xlu1 %v1074_v62, %s1934_s23  ;;  %v1675_v62 = vld [vmem:[%s2367_s19] ss:$0 sm:$0xff]  ;;  %s2373_s19 = sld [smem:[#allocation35_spill]]  ;;  %s1320_s23 = scalar_lea.sflag [#allocation6], %s2127_s13 }
 0x2ee   : > { %p1849_p0 = pnand %p1848_p13, %p1844_p10 }
 0x2f0   : > { %1278 = vmatpush.bf16.msrb.mxu0 %v1565_v61 }
 0x2f2   : > { %v1013_v63 = vpop.f32.mrf.mxu1 }
 0x2f4   : > { %1279 = vmatpush.bf16.msrb.mxu0 %v1564_v6 }
 0x2f6   : > { %v954_v0 = vpop.f32.mrf.mxu2 }
 0x2f7   : > { %v1071_v17 = vmul.f32 %v1028_v15, %v954_v0 }
 0x2fe   : > { %v956_v1 = vpop.f32.mrf.mxu2 }
 0x33b   : > { %v1077_v16 = vpop.permute.xlu2 %1076 }
 0x33c   : > { %v1087_v19 = vsel %vm817_vm2, %v1071_v17, %v1077_v16  ;;  %vm1140_vm2 = vweird.f32 %v1696_v31 }
 0x33d   : > { %v2229_v36 = vsel %vm1140_vm2, %v1696_v31, %v1139_v35 }
 0x355   : > { %v1081_v18 = vpop.permute.xlu0 %1080 }
 0x356   : > { %v1089_v20 = vsel %vm1088_vm6, %v1087_v19, %v1081_v18 }
 0x35f   : > { %v1085_v21 = vpop.permute.xlu1 %1084 }
 0x360   : > { %v1091_v22 = vsel %vm1090_vm7, %v1089_v20, %v1085_v21  ;;  %v1676_v21 = vld [vmem:[%s2368_s20] ss:$0 sm:$0xff] }
 0x361   : > { %v1092_v23 = vpack.c.bf16 %v1091_v22, %v1091_v22 }
 0x363   : > { %1524 = vmatmul.msk.bf16.vlgmr.msra.gmra.mxu2 %vm710_vm0, %v1092_v23 }
 0x3e6   : > { %v1125_v25 = vpop.f32.mrf.mxu2 }
 0x3e7   : > { %v1126_v26 = vadd.f32 %v1672_v24, %v1125_v25 }
 0x3e9   : > { %v1129_v27 = vadd.f32 %v1126_v26, %v2167_v4 }
 0x3eb   : > { %v1132_v28 = vsel %vm710_vm0, %v1129_v27, 0.0 }
 0x3ec   : > { %1133 = vadd.xlane.f32.xlu2 %v1132_v28 }
 0x3ee   : > { %v1127_v29 = vpop.f32.mrf.mxu2 }
 0x45f   : > { %v1134_v37 = vpop.xlane.xlu2 %1133 }
 0x460   : > { %v1142_v38 = vmul.f32 %v2229_v36, %v1134_v37 }
 0x462   : > { %v1143_v39 = vsub.f32 %v1129_v27, %v1142_v38 }
 0x464   : > { %v1144_v40 = vmul.f32 %v1143_v39, %v1143_v39 }
 0x466   : > { %v1145_v4 = vsel %vm710_vm0, %v1144_v40, 0.0 }
 0x467   : > { %1146 = vadd.xlane.f32.xlu0 %v1145_v4 }
 0x4da   : > { %v1147_v43 = vpop.xlane.xlu0 %1146 }
 0x4db   : > { %v1148_v44 = vmul.f32 %v1147_v43, %v2229_v36  ;;  %v1678_v43 = vld [vmem:[%s2373_s19] ss:$0 sm:$0xff] }
 0x4dd   : > { %v1149_v45 = vadd.f32 1e-05, %v1148_v44 }
 0x4df   : > { %1697 = vrsqrt.f32 %v1149_v45  ;;  %vm1156_vm9 = vweird.f32 %v1149_v45 }
 0x4e5   : > { %v1698_v46 = vpop.eup %1697 }
 0x4e6   : > { %v1151_v47 = vmul.f32 %v1698_v46, %v1149_v45  ;;  %vm1157_vm8 = vweird.f32 %v1698_v46 }
 0x4e7   : > { %vm1158_vm10 = vmor %vm1156_vm9, %vm1157_vm8 }
 0x4e8   : > { %v1152_v48 = vmul.f32 %v1698_v46, %v1151_v47 }
 0x4ea   : > { %v1153_v49 = vmul.f32 0.5, %v1152_v48 }
 0x4ec   : > { %v1154_v50 = vsub.f32 1.5, %v1153_v49 }
 0x4ee   : > { %v1155_v51 = vmul.f32 %v1698_v46, %v1154_v50 }
 0x4f0   : > { %v1159_v53 = vsel %vm1158_vm10, %v1698_v46, %v1155_v51 }
 0x4f1   : > { %v1160_v55 = vmul.f32 %v1159_v53, %v1143_v39 }
 0x4f3   : > { %v1164_v56 = vmul.f32 %v1673_v52, %v1160_v55 }
 0x4f5   : > { %v1168_v57 = vadd.f32 %v1674_v54, %v1164_v56 }
 0x4f7   : > { %v1169_v58 = vpack.c.bf16 %v1168_v57, %v1168_v57 }
 0x4f9   : > { %1533 = vmatmul.msk.bf16.vlgmr.msra.gmra.mxu3 %vm710_vm0, %v1169_v58 }
 0x57c   : > { %v1202_v63 = vpop.f32.mrf.mxu3 }
 0x57d   : > { %v1203_v0 = vadd.f32 %v1675_v62, %v1202_v63 }
 0x57f   : > { %1227 = vrot.lane.b32.xlu1 %v1203_v0, %s1936_s7  ;;  %v1534_v2 = vmul.f32 -1.442695, %v1203_v0  ;;  %s1333_s7 = sshll.u32 %s675_s27, 4  ;;  %s1334_s7 = int_to_ptr.vmem [resolvable:$true] %s1333_s7 }
 0x581   : > { %1699 = vpow2.f32 %v1534_v2 }
 0x584   : > { %v1204_v1 = vpop.f32.mrf.mxu3 }
 0x587   : > { %v1700_v3 = vpop.eup %1699 }
 0x588   : > { %v1209_v5 = vadd.f32 1.0, %v1700_v3 }
 0x58a   : > { %1701 = vrcp.f32 %v1209_v5  ;;  %v1221_v12 = vand.u32 2147483648, %v1209_v5  ;;  %vm1215_vm12 = vweird.f32 %v1209_v5  ;;  %v1219_v13 = vand.u32 2147483647, %v1209_v5 }
 0x58c   : > { %v1222_v15 = vor.u32 1.1754944e-38, %v1221_v12  ;;  %vm1220_vm14 = vcmp.eq.f32.partialorder %v1219_v13, 8.507059e+37 }
 0x590   : > { %v1702_v7 = vpop.eup %1701 }
 0x591   : > { %v1211_v8 = vmul.f32 %v1702_v7, %v1209_v5  ;;  %vm1216_vm11 = vweird.f32 %v1702_v7 }
 0x592   : > { %vm1217_vm13 = vmor %vm1215_vm12, %vm1216_vm11 }
 0x593   : > { %v1212_v9 = vsub.f32 1.0, %v1211_v8 }
 0x595   : > { %v1213_v10 = vmul.f32 %v1702_v7, %v1212_v9 }
 0x597   : > { %v1214_v11 = vadd.f32 %v1702_v7, %v1213_v10 }
 0x599   : > { %v1218_v14 = vsel %vm1217_vm13, %v1702_v7, %v1214_v11 }
 0x59a   : > { %v1223_v16 = vsel %vm1220_vm14, %v1222_v15, %v1218_v14 }
 0x59b   : > { %v1225_v17 = vmul.f32 %v1223_v16, %v1203_v0 }
 0x5f1   : > { %v1228_v18 = vpop.permute.xlu1 %1227 }
 0x5f2   : > { %v1230_v19 = vmul.f32 %v1228_v18, %v1225_v17 }
 0x5f4   : > { %v1231_v20 = vpack.c.bf16 %v1230_v19, %v1230_v19 }
 0x5f6   : > { %1551 = vmatmul.msk.bf16.vlgmr.msrb.gmra.mxu0 %vm1268_vm15, %v1231_v20 }
 0x673   : > { %v1281_v22 = vpop.f32.mrf.mxu0 }
 0x674   : > { %v1282_v23 = vadd.f32 %v1676_v21, %v1281_v22 }
 0x676   : > { %v1285_v24 = vadd.f32 %v1282_v23, %v1168_v57 }
 0x678   : > { %v1288_v25 = vsel %vm710_vm0, %v1285_v24, 0.0 }
 0x679   : > { %1289 = vadd.xlane.f32.xlu1 %v1288_v25 }
 0x67b   : > { %v1283_v26 = vpop.f32.mrf.mxu0 }
 0x6ec   : > { %v1290_v27 = vpop.xlane.xlu1 %1289 }
 0x6ed   : > { %v1291_v28 = vmul.f32 %v1290_v27, %v2229_v36 }
 0x6ef   : > { %v1292_v29 = vsub.f32 %v1285_v24, %v1291_v28 }
 0x6f1   : > { %v1293_v30 = vmul.f32 %v1292_v29, %v1292_v29 }
 0x6f3   : > { %v1294_v31 = vsel %vm710_vm0, %v1293_v30, 0.0 }
 0x6f4   : > { %1295 = vadd.xlane.f32.xlu2 %v1294_v31 }
 0x767   : > { %v1296_v32 = vpop.xlane.xlu2 %1295 }
 0x768   : > { %v1297_v33 = vmul.f32 %v1296_v32, %v2229_v36 }
 0x76a   : > { %v1298_v34 = vadd.f32 1e-05, %v1297_v33 }
 0x76c   : > { %1703 = vrsqrt.f32 %v1298_v34  ;;  %vm1305_vm3 = vweird.f32 %v1298_v34 }
 0x772   : > { %v1704_v35 = vpop.eup %1703 }
 0x773   : > { %v1300_v37 = vmul.f32 %v1704_v35, %v1298_v34  ;;  %vm1306_vm1 = vweird.f32 %v1704_v35 }
 0x774   : > { %vm1307_vm4 = vmor %vm1305_vm3, %vm1306_vm1 }
 0x775   : > { %v1301_v38 = vmul.f32 %v1704_v35, %v1300_v37 }
 0x777   : > { %v1302_v39 = vmul.f32 0.5, %v1301_v38 }
 0x779   : > { %v1303_v40 = vsub.f32 1.5, %v1302_v39 }
 0x77b   : > { %v1304_v4 = vmul.f32 %v1704_v35, %v1303_v40 }
 0x77d   : > { %v1308_v36 = vsel %vm1307_vm4, %v1704_v35, %v1304_v4 }
 0x77e   : > { %v1309_v42 = vmul.f32 %v1308_v36, %v1292_v29 }
 0x780   : > { %v1313_v44 = vmul.f32 %v1677_v41, %v1309_v42 }
 0x782   : > { %v1317_v45 = vadd.f32 %v1678_v43, %v1313_v44 }
 0x784   : > { %1318 = vst.msk [vmem:[%s675_s27] sm:$0xff] %vm710_vm0, %v1317_v45 }
 0x785   : > { %1852 = shalt.err (!%p1849_p0)
}
 0x786   : > { %1580 = dma.vmem_to_hbm [thread:$0]  (%p2101_p2), %s1334_s7, 128, %s1336_s16, %s1320_s23  }
 0x787 PF: > { %s2374_s13 = sld [smem:[#allocation18_spill]]  ;;  %p1597_p4 = pnand %p1478_p6, %p2108_p5 }
 0x789   : > { %p1598_p7 = pneg %p1597_p4 }
 0x78d   : > { %s1347_s14 = sand.u32 1, %s2374_s13  }
 0x78e   : > { %s1348_s15 = scalar_lea.sflag [#allocation6], %s1347_s14 }
 0x78f   : > { %1894 = dma.done.wait (%p1598_p7), %s1348_s15, 128  }
 0x790   : > { %1896 = vsyncadd (%p1598_p7), %s1348_s15, 4294967168  ;;  %s37_s29 = sadd.s32 1, %s1919_s29   ;;  %s2376_s26 = sld [smem:[#allocation19_spill]] }
 0x791   : > { %p34_p8 = scmp.ge.s32.totalorder %s37_s29, 4   ;;  %s2377_s12 = sld [smem:[#allocation23_spill]] }
 0x792   : > { %s2378_s27 = sld [smem:[#allocation20_spill]]  ;;  %s2380_s24 = smov %s1903_s25 }
 0x793   : > { %s2379_s28 = sld [smem:[#allocation21_spill]]  ;;  %36 = sbr.rel (!%p34_p8) target bundleno = 22 (0x16), region = 167 }
 0x796   : > { %s2381_s25 = smov %s2376_s26 }
 0x797   : > { %s2382_s26 = smov %s2377_s12 }
 0x798   :  { %1354 = vsyncpa [#allocation5], 1 }
 0x799   :  { %1356 = vsyncpa [#allocation5 + $0x1], 1 }
 0x79a   :  { %1357 = vsyncpa [#allocation8], 1 }
 0x79b   :  { %1359 = vsyncpa [#allocation8 + $0x1], 1 }
 0x79c   :  { %1360 = vsyncpa [#allocation11], 1 }
 0x79d   :  { %1361 = vsyncpa [#allocation6], 1 }
 0x79e   :  { %1363 = vsyncpa [#allocation6 + $0x1], 1 }

</bundles_post_ra>
